<compile_context>
chip_gen: v7x
topology: tpu7x:2x2x1
jax: 0.10.0
libtpu: 0.0.40
codegen_flags: <defaults>
</compile_context>

<pallas_src>
import math
import jax
import jax.numpy as jnp
from jax.experimental import pallas as pl
from jax.experimental.pallas import tpu as pltpu

# ----------------------------- config -----------------------------
B, T, S = 2, 8, 8          # batch, decoder seq, encoder seq
D, H = 32, 4               # hidden_dim, num heads
HD = D // H                # head dim
FF = 4 * D                 # feedforward inner dim
LN_EPS = 1e-5
SCALE = 1.0 / math.sqrt(HD)

assert T == S, "KV-slab lane packing assumes equal decoder/encoder lengths here"
assert FF >= 3 * D and FF % 128 == 0

# vec slab row indices (each row is FF=128 lanes wide, f32) ----------------
(LN1_G, LN1_B, B_QKV1, B_L1,
 LN2_G, LN2_B, B_QKV2, B_L2,
 LN3_G, LN3_B, B_F1, B_F2) = range(12)
N_VEC = 12


# ----------------------------- kernel -----------------------------
def decoder_block_kernel(xe_ref, w1_ref, w2_ref, wf1_ref, wf2_ref, vec_ref,
                         out_ref, kv_ref):
    f32, bf16 = jnp.float32, jnp.bfloat16

    xe = xe_ref[...]              # (B*T + B*S, D) f32
    x = xe[:B * T]                # (16, 32) decoder activations
    enc = xe[B * T:]              # (16, 32) encoder output
    w1 = w1_ref[...]              # (D, 4D) bf16: [wq1*s | wk1 | wv1 | wl1]
    w2 = w2_ref[...]              # (D, 4D) bf16: [wq2*s | wk2 | wv2 | wl2]
    wf1 = wf1_ref[...]            # (D, FF) bf16
    wf2 = wf2_ref[...]            # (FF, D) bf16
    vec = vec_ref[...]            # (12, FF) f32 (LN params + biases, lane-packed)

    def vrow(i):                  # (1, D) f32 slice of a slab row
        return vec[i:i + 1, :D]

    def ln(h, gi, bi):
        mu = jnp.mean(h, axis=-1, keepdims=True)
        var = jnp.mean((h - mu) ** 2, axis=-1, keepdims=True)
        return (h - mu) * jax.lax.rsqrt(var + LN_EPS) * vrow(gi) + vrow(bi)

    # in-kernel additive causal mask for decoder self-attention; the encoder
    # mask is all-zeros in this path so it is dropped entirely.
    r = jax.lax.broadcasted_iota(jnp.int32, (T, T), 0)
    c = jax.lax.broadcasted_iota(jnp.int32, (T, T), 1)
    causal = jnp.where(r >= c, 0.0, -1e9).astype(f32)

    def attention(q, k, v, Tk, mask):
        # (B*seq, D) -> (B*H, seq, HD) once per tensor, single batched dot each.
        qh = q.reshape(B, T, H, HD).transpose(0, 2, 1, 3).reshape(B * H, T, HD)
        kh = k.reshape(B, Tk, H, HD).transpose(0, 2, 1, 3).reshape(B * H, Tk, HD)
        vh = v.reshape(B, Tk, H, HD).transpose(0, 2, 1, 3).reshape(B * H, Tk, HD)
        s = jnp.einsum("bqd,bkd->bqk", qh.astype(bf16), kh.astype(bf16),
                       preferred_element_type=f32)       # SCALE already in wq/bq
        if mask is not None:
            s = s + mask
        s = s - jnp.max(s, axis=-1, keepdims=True)
        p = jnp.exp(s)
        p = p * pl.reciprocal(jnp.sum(p, axis=-1, keepdims=True), approx=True)
        o = jnp.einsum("bqk,bkd->bqd", p.astype(bf16), vh.astype(bf16),
                       preferred_element_type=f32)        # (B*H, T, HD)
        return o.reshape(B, H, T, HD).transpose(0, 2, 1, 3).reshape(B * T, D)

    # ---- self-attention sub-block (fused QKV: one (16,32)x(32,128) matmul) ----
    res = x
    h16 = ln(x, LN1_G, LN1_B).astype(bf16)
    proj = jnp.dot(h16, w1, preferred_element_type=f32) + vec[B_QKV1:B_QKV1 + 1]
    q, sk, sv = proj[:, 0:D], proj[:, D:2 * D], proj[:, 2 * D:3 * D]
    attn = attention(q, sk, sv, T, causal)
    x = res + jnp.dot(attn.astype(bf16), w1[:, 3 * D:4 * D],
                      preferred_element_type=f32) + vrow(B_L1)   # dropout_1 = id

    # ---- cross-attention sub-block (q from decoder side, k/v from encoder) ----
    res = x
    h16 = ln(x, LN2_G, LN2_B).astype(bf16)
    qproj = jnp.dot(h16, w2, preferred_element_type=f32) + vec[B_QKV2:B_QKV2 + 1]
    kvproj = jnp.dot(enc.astype(bf16), w2,
                     preferred_element_type=f32) + vec[B_QKV2:B_QKV2 + 1]
    q, ck, cv = qproj[:, 0:D], kvproj[:, D:2 * D], kvproj[:, 2 * D:3 * D]
    attn = attention(q, ck, cv, S, None)
    x = res + jnp.dot(attn.astype(bf16), w2[:, 3 * D:4 * D],
                      preferred_element_type=f32) + vrow(B_L2)   # dropout_2 = id

    # ---- feedforward sub-block ----
    res = x
    h16 = ln(x, LN3_G, LN3_B).astype(bf16)
    f = jnp.maximum(jnp.dot(h16, wf1, preferred_element_type=f32)
                    + vec[B_F1:B_F1 + 1], 0.0)
    x = res + (jnp.dot(f.astype(bf16), wf2, preferred_element_type=f32)
               + vrow(B_F2))

    out_ref[...] = x                                              # (16, 32)
    # single lane-dense 128-wide KV write-back (one unmasked store / one DMA)
    kv_ref[...] = jnp.concatenate([sk, sv, ck, cv], axis=-1)      # (16, 128)


# --------------------- one-time parameter packing ---------------------
def pack_decoder_params(params):
    """Pack the 26 parameter tensors into 5 slabs ONCE (hoisted out of the call path).
    SCALE is folded into wq*/bq* here, so the kernel never multiplies scores."""
    bf16 = jnp.bfloat16
    w1 = jnp.concatenate([params["wq1"] * SCALE, params["wk1"],
                          params["wv1"], params["wl1"]], axis=1).astype(bf16)
    w2 = jnp.concatenate([params["wq2"] * SCALE, params["wk2"],
                          params["wv2"], params["wl2"]], axis=1).astype(bf16)
    wf1 = params["wf1"].astype(bf16)                              # (D, FF)
    wf2 = params["wf2"].astype(bf16)                              # (FF, D)

    vec = jnp.zeros((N_VEC, FF), jnp.float32)
    vec = vec.at[LN1_G, :D].set(params["ln1_g"][0])
    vec = vec.at[LN1_B, :D].set(params["ln1_b"][0])
    vec = vec.at[B_QKV1, :3 * D].set(jnp.concatenate(
        [params["bq1"] * SCALE, params["bk1"], params["bv1"]], axis=1)[0])
    vec = vec.at[B_L1, :D].set(params["bl1"][0])
    vec = vec.at[LN2_G, :D].set(params["ln2_g"][0])
    vec = vec.at[LN2_B, :D].set(params["ln2_b"][0])
    vec = vec.at[B_QKV2, :3 * D].set(jnp.concatenate(
        [params["bq2"] * SCALE, params["bk2"], params["bv2"]], axis=1)[0])
    vec = vec.at[B_L2, :D].set(params["bl2"][0])
    vec = vec.at[LN3_G, :D].set(params["ln3_g"][0])
    vec = vec.at[LN3_B, :D].set(params["ln3_b"][0])
    vec = vec.at[B_F1, :FF].set(params["bf1"][0])
    vec = vec.at[B_F2, :D].set(params["bf2"][0])
    return (w1, w2, wf1, wf2, vec)


# ----------------------------- wrapper -----------------------------
@jax.jit
def _decoder_block_impl(x, encoder_output, w1, w2, wf1, wf2, vec):
    # single input activation operand: [decoder rows ; encoder rows]
    xe = jnp.concatenate([x.reshape(B * T, D),
                          encoder_output.reshape(B * S, D)], axis=0)

    vspec = pl.BlockSpec(memory_space=pltpu.MemorySpace.VMEM)     # full-array VMEM
    out, kv = pl.pallas_call(
        decoder_block_kernel,
        out_shape=(jax.ShapeDtypeStruct((B * T, D), jnp.float32),     # block output
                   jax.ShapeDtypeStruct((B * T, 4 * D), jnp.float32)),  # [sk|sv|ck|cv]
        in_specs=[vspec] * 6,
        out_specs=(vspec, vspec),
        compiler_params=pltpu.CompilerParams(vmem_limit_bytes=32 * 1024 * 1024),
    )(xe, w1, w2, wf1, wf2, vec)

    # cheap layout plumbing outside the kernel
    out = out.reshape(B, T, D)

    def split_heads(m):                                   # (16, D) -> (B, H, seq, HD)
        return m.reshape(B, T, H, HD).transpose(0, 2, 1, 3)

    sk = split_heads(kv[:, 0 * D:1 * D])
    sv = split_heads(kv[:, 1 * D:2 * D])
    ck = split_heads(kv[:, 2 * D:3 * D])
    cv = split_heads(kv[:, 3 * D:4 * D])
    return out, sk, sv, ck, cv


def decoder_block(x, encoder_output, packed_params):
    """x: (B, T, D), encoder_output: (B, S, D), packed_params from pack_decoder_params.
    Returns (out, ((self_k, self_v), (cross_k, cross_v)))."""
    out, sk, sv, ck, cv = _decoder_block_impl(x, encoder_output, *packed_params)
    return out, ((sk, sv), (ck, cv))


# -------------------------- plain-JAX reference --------------------------
def _ref_ln(x, g, b):
    mu = jnp.mean(x, axis=-1, keepdims=True)
    var = jnp.mean((x - mu) ** 2, axis=-1, keepdims=True)
    return (x - mu) * jax.lax.rsqrt(var + LN_EPS) * g + b


def _ref_mha(hq, hkv, wq, bq, wk, bk, wv, bv, mask):
    Bq, Tq, _ = hq.shape
    Tk = hkv.shape[1]
    q = (hq @ wq + bq).reshape(Bq, Tq, H, HD).transpose(0, 2, 1, 3)
    k = (hkv @ wk + bk).reshape(Bq, Tk, H, HD).transpose(0, 2, 1, 3)
    v = (hkv @ wv + bv).reshape(Bq, Tk, H, HD).transpose(0, 2, 1, 3)
    s = jnp.einsum("bhqd,bhkd->bhqk", q, k) * SCALE + mask[None, None]
    p = jax.nn.softmax(s, axis=-1)
    o = jnp.einsum("bhqk,bhkd->bhqd", p, v)
    return o.transpose(0, 2, 1, 3).reshape(Bq, Tq, D), k, v


def reference(x, enc, dmask, emask, P):
    res = x
    h = _ref_ln(x, P["ln1_g"], P["ln1_b"])
    attn, sk, sv = _ref_mha(h, h, P["wq1"], P["bq1"], P["wk1"], P["bk1"],
                            P["wv1"], P["bv1"], dmask)
    x = res + (attn @ P["wl1"] + P["bl1"])
    res = x
    h = _ref_ln(x, P["ln2_g"], P["ln2_b"])
    attn, ck, cv = _ref_mha(h, enc, P["wq2"], P["bq2"], P["wk2"], P["bk2"],
                            P["wv2"], P["bv2"], emask)
    x = res + (attn @ P["wl2"] + P["bl2"])
    res = x
    h = _ref_ln(x, P["ln3_g"], P["ln3_b"])
    f = jnp.maximum(h @ P["wf1"] + P["bf1"], 0.0)
    x = res + (f @ P["wf2"] + P["bf2"])
    return x, sk, sv, ck, cv


# ----------------------------- main -----------------------------
def _init_params(key):
    names_shapes = {
        "ln1_g": (1, D), "ln1_b": (1, D),
        "wq1": (D, D), "bq1": (1, D), "wk1": (D, D), "bk1": (1, D),
        "wv1": (D, D), "bv1": (1, D), "wl1": (D, D), "bl1": (1, D),
        "ln2_g": (1, D), "ln2_b": (1, D),
        "wq2": (D, D), "bq2": (1, D), "wk2": (D, D), "bk2": (1, D),
        "wv2": (D, D), "bv2": (1, D), "wl2": (D, D), "bl2": (1, D),
        "ln3_g": (1, D), "ln3_b": (1, D),
        "wf1": (D, FF), "bf1": (1, FF), "wf2": (FF, D), "bf2": (1, D),
    }
    params = {}
    keys = jax.random.split(key, len(names_shapes))
    for k_i, (name, shape) in zip(keys, names_shapes.items()):
        if name.startswith("ln") and name.endswith("_g"):
            params[name] = jnp.ones(shape, jnp.float32)
        else:
            # non-zero biases too, so the SCALE-folding into bq* is actually tested
            params[name] = 0.02 * jax.random.normal(k_i, shape, jnp.float32)
    return params


if __name__ == "__main__":
    key = jax.random.PRNGKey(0)
    k_x, k_e, k_p = jax.random.split(key, 3)

    x = jax.random.normal(k_x, (B, T, D), jnp.float32)
    encoder_output = jax.random.normal(k_e, (B, S, D), jnp.float32)
    params = _init_params(k_p)

    packed = pack_decoder_params(params)      # one-time packing (off the hot path)

    out, (self_kv, cross_kv) = decoder_block(x, encoder_output, packed)
    jax.block_until_ready(out)

    # correctness check against a plain-JAX reference (causal self-attn mask,
    # unmasked cross-attn -- the semantics the kernel implements)
    causal = jnp.where(
        jnp.arange(T)[:, None] >= jnp.arange(T)[None, :], 0.0, -1e9
    ).astype(jnp.float32)
    enc_mask = jnp.zeros((T, S), jnp.float32)
    r_out, r_sk, r_sv, r_ck, r_cv = reference(x, encoder_output, causal, enc_mask, params)

    assert out.shape == (B, T, D)
    assert self_kv[0].shape == (B, H, T, HD) and cross_kv[0].shape == (B, H, S, HD)
    # bf16 MXU + approx reciprocal softmax: ~1e-3-level error, intentional.
    assert jnp.allclose(out, r_out, atol=1e-2, rtol=1e-2)
    assert jnp.allclose(self_kv[0], r_sk, atol=1e-2, rtol=1e-2)
    assert jnp.allclose(self_kv[1], r_sv, atol=1e-2, rtol=1e-2)
    assert jnp.allclose(cross_kv[0], r_ck, atol=1e-2, rtol=1e-2)
    assert jnp.allclose(cross_kv[1], r_cv, atol=1e-2, rtol=1e-2)

    print("KERNEL_OK")
</pallas_src>

<mosaic_0001>
module attributes {stable_mosaic.version = 11 : i64} {
  func.func @decoder_block_kernel(%arg0: memref<32x32xf32, #tpu.memory_space<vmem>>, %arg1: memref<32x128xbf16, #tpu.memory_space<vmem>>, %arg2: memref<32x128xbf16, #tpu.memory_space<vmem>>, %arg3: memref<32x128xbf16, #tpu.memory_space<vmem>>, %arg4: memref<128x32xbf16, #tpu.memory_space<vmem>>, %arg5: memref<12x128xf32, #tpu.memory_space<vmem>>, %arg6: memref<16x32xf32, #tpu.memory_space<vmem>>, %arg7: memref<16x128xf32, #tpu.memory_space<vmem>>) attributes {dimension_semantics = [], scalar_prefetch = 0 : i64, scratch_operands = 0 : i64, tpu.core_type = #tpu.core_type<tc>} {
    %c0 = arith.constant 0 : index
    %c0_0 = arith.constant 0 : index
    %0 = vector.load %arg0[%c0, %c0_0] : memref<32x32xf32, #tpu.memory_space<vmem>>, vector<32x32xf32>
    %1 = vector.extract_strided_slice %0 {offsets = [0, 0], sizes = [16, 32], strides = [1, 1]} : vector<32x32xf32> to vector<16x32xf32>
    %2 = vector.extract_strided_slice %0 {offsets = [16, 0], sizes = [16, 32], strides = [1, 1]} : vector<32x32xf32> to vector<16x32xf32>
    %c0_1 = arith.constant 0 : index
    %c0_2 = arith.constant 0 : index
    %3 = vector.load %arg1[%c0_1, %c0_2] : memref<32x128xbf16, #tpu.memory_space<vmem>>, vector<32x128xbf16>
    %c0_3 = arith.constant 0 : index
    %c0_4 = arith.constant 0 : index
    %4 = vector.load %arg2[%c0_3, %c0_4] : memref<32x128xbf16, #tpu.memory_space<vmem>>, vector<32x128xbf16>
    %c0_5 = arith.constant 0 : index
    %c0_6 = arith.constant 0 : index
    %5 = vector.load %arg3[%c0_5, %c0_6] : memref<32x128xbf16, #tpu.memory_space<vmem>>, vector<32x128xbf16>
    %c0_7 = arith.constant 0 : index
    %c0_8 = arith.constant 0 : index
    %6 = vector.load %arg4[%c0_7, %c0_8] : memref<128x32xbf16, #tpu.memory_space<vmem>>, vector<128x32xbf16>
    %c0_9 = arith.constant 0 : index
    %c0_10 = arith.constant 0 : index
    %7 = vector.load %arg5[%c0_9, %c0_10] : memref<12x128xf32, #tpu.memory_space<vmem>>, vector<12x128xf32>
    %8 = tpu.iota {dimensions = array<i32: 0>} : vector<8x8xi32>
    %9 = tpu.iota {dimensions = array<i32: 1>} : vector<8x8xi32>
    %10 = arith.cmpi sge, %8, %9 : vector<8x8xi32>
    %cst = arith.constant 0.000000e+00 : f32
    %cst_11 = arith.constant -1.000000e+09 : f32
    %11 = vector.broadcast %cst : f32 to vector<8x8xf32>
    %12 = vector.broadcast %cst_11 : f32 to vector<8x8xf32>
    %13 = arith.select %10, %11, %12 : vector<8x8xi1>, vector<8x8xf32>
    %cst_12 = arith.constant dense<0.000000e+00> : vector<16xf32>
    %14 = vector.multi_reduction <add>, %1, %cst_12 [1] : vector<16x32xf32> to vector<16xf32>
    %15 = vector.shape_cast %14 : vector<16xf32> to vector<16x1xf32>
    %cst_13 = arith.constant 3.200000e+01 : f32
    %16 = vector.broadcast %cst_13 : f32 to vector<16x1xf32>
    %17 = arith.divf %15, %16 : vector<16x1xf32>
    %18 = vector.broadcast %17 : vector<16x1xf32> to vector<16x32xf32>
    %19 = arith.subf %1, %18 : vector<16x32xf32>
    %20 = arith.mulf %19, %19 : vector<16x32xf32>
    %cst_14 = arith.constant dense<0.000000e+00> : vector<16xf32>
    %21 = vector.multi_reduction <add>, %20, %cst_14 [1] : vector<16x32xf32> to vector<16xf32>
    %22 = vector.shape_cast %21 : vector<16xf32> to vector<16x1xf32>
    %cst_15 = arith.constant 3.200000e+01 : f32
    %23 = vector.broadcast %cst_15 : f32 to vector<16x1xf32>
    %24 = arith.divf %22, %23 : vector<16x1xf32>
    %25 = vector.broadcast %17 : vector<16x1xf32> to vector<16x32xf32>
    %26 = arith.subf %1, %25 : vector<16x32xf32>
    %cst_16 = arith.constant 9.99999974E-6 : f32
    %27 = vector.broadcast %cst_16 : f32 to vector<16x1xf32>
    %28 = arith.addf %24, %27 : vector<16x1xf32>
    %29 = math.rsqrt %28 : vector<16x1xf32>
    %30 = vector.broadcast %29 : vector<16x1xf32> to vector<16x32xf32>
    %31 = arith.mulf %26, %30 : vector<16x32xf32>
    %32 = vector.extract_strided_slice %7 {offsets = [0, 0], sizes = [1, 32], strides = [1, 1]} : vector<12x128xf32> to vector<1x32xf32>
    %33 = vector.broadcast %32 : vector<1x32xf32> to vector<16x32xf32>
    %34 = arith.mulf %31, %33 : vector<16x32xf32>
    %35 = vector.extract_strided_slice %7 {offsets = [1, 0], sizes = [1, 32], strides = [1, 1]} : vector<12x128xf32> to vector<1x32xf32>
    %36 = vector.broadcast %35 : vector<1x32xf32> to vector<16x32xf32>
    %37 = arith.addf %34, %36 : vector<16x32xf32>
    %38 = arith.truncf %37 : vector<16x32xf32> to vector<16x32xbf16>
    %cst_17 = arith.constant dense<0.000000e+00> : vector<16x128xf32>
    %39 = tpu.matmul %38, %3, %cst_17 {dimension_numbers = #tpu.dot_dimension_numbers<[1], [0], [0], [1], [0, 0, 1, 1], [], []>} : vector<16x32xbf16>, vector<32x128xbf16>, vector<16x128xf32> -> vector<16x128xf32>
    %40 = vector.extract_strided_slice %7 {offsets = [2, 0], sizes = [1, 128], strides = [1, 1]} : vector<12x128xf32> to vector<1x128xf32>
    %41 = vector.broadcast %40 : vector<1x128xf32> to vector<16x128xf32>
    %42 = arith.addf %39, %41 : vector<16x128xf32>
    %43 = vector.extract_strided_slice %42 {offsets = [0, 0], sizes = [16, 32], strides = [1, 1]} : vector<16x128xf32> to vector<16x32xf32>
    %44 = vector.extract_strided_slice %42 {offsets = [0, 32], sizes = [16, 32], strides = [1, 1]} : vector<16x128xf32> to vector<16x32xf32>
    %45 = vector.extract_strided_slice %42 {offsets = [0, 64], sizes = [16, 32], strides = [1, 1]} : vector<16x128xf32> to vector<16x32xf32>
    %46 = vector.shape_cast %43 : vector<16x32xf32> to vector<2x8x4x8xf32>
    %47 = tpu.transpose %46, [0, 2, 1, 3] : vector<2x8x4x8xf32> -> vector<2x4x8x8xf32>
    %48 = vector.shape_cast %47 : vector<2x4x8x8xf32> to vector<8x8x8xf32>
    %49 = vector.shape_cast %44 : vector<16x32xf32> to vector<2x8x4x8xf32>
    %50 = tpu.transpose %49, [0, 2, 1, 3] : vector<2x8x4x8xf32> -> vector<2x4x8x8xf32>
    %51 = vector.shape_cast %50 : vector<2x4x8x8xf32> to vector<8x8x8xf32>
    %52 = vector.shape_cast %45 : vector<16x32xf32> to vector<2x8x4x8xf32>
    %53 = tpu.transpose %52, [0, 2, 1, 3] : vector<2x8x4x8xf32> -> vector<2x4x8x8xf32>
    %54 = vector.shape_cast %53 : vector<2x4x8x8xf32> to vector<8x8x8xf32>
    %55 = arith.truncf %48 : vector<8x8x8xf32> to vector<8x8x8xbf16>
    %56 = arith.truncf %51 : vector<8x8x8xf32> to vector<8x8x8xbf16>
    "tpu.trace_start"() <{level = 10 : i32, message = "bqd,bkd->bqk"}> : () -> ()
    %cst_18 = arith.constant dense<0.000000e+00> : vector<8x8x8xf32>
    %57 = tpu.matmul %55, %56, %cst_18 {dimension_numbers = #tpu.dot_dimension_numbers<[2], [2], [1], [1], [0, 0, 0, 1, 1, 1], [0], [0]>} : vector<8x8x8xbf16>, vector<8x8x8xbf16>, vector<8x8x8xf32> -> vector<8x8x8xf32>
    "tpu.trace_stop"() : () -> ()
    %58 = vector.shape_cast %13 : vector<8x8xf32> to vector<1x8x8xf32>
    %59 = vector.broadcast %58 : vector<1x8x8xf32> to vector<8x8x8xf32>
    %60 = arith.addf %57, %59 : vector<8x8x8xf32>
    %cst_19 = arith.constant dense<0xFF800000> : vector<8x8xf32>
    %61 = vector.multi_reduction <maximumf>, %60, %cst_19 [2] : vector<8x8x8xf32> to vector<8x8xf32>
    %62 = vector.shape_cast %61 : vector<8x8xf32> to vector<8x8x1xf32>
    %63 = vector.broadcast %62 : vector<8x8x1xf32> to vector<8x8x8xf32>
    %64 = arith.subf %60, %63 : vector<8x8x8xf32>
    %65 = math.exp %64 : vector<8x8x8xf32>
    %cst_20 = arith.constant dense<0.000000e+00> : vector<8x8xf32>
    %66 = vector.multi_reduction <add>, %65, %cst_20 [2] : vector<8x8x8xf32> to vector<8x8xf32>
    %67 = vector.shape_cast %66 : vector<8x8xf32> to vector<8x8x1xf32>
    %68 = tpu.reciprocal %67 {approx = true} : vector<8x8x1xf32> -> vector<8x8x1xf32>
    %69 = vector.broadcast %68 : vector<8x8x1xf32> to vector<8x8x8xf32>
    %70 = arith.mulf %65, %69 : vector<8x8x8xf32>
    %71 = arith.truncf %70 : vector<8x8x8xf32> to vector<8x8x8xbf16>
    %72 = arith.truncf %54 : vector<8x8x8xf32> to vector<8x8x8xbf16>
    "tpu.trace_start"() <{level = 10 : i32, message = "bqk,bkd->bqd"}> : () -> ()
    %cst_21 = arith.constant dense<0.000000e+00> : vector<8x8x8xf32>
    %73 = tpu.matmul %71, %72, %cst_21 {dimension_numbers = #tpu.dot_dimension_numbers<[2], [1], [1], [2], [0, 0, 0, 1, 1, 2], [0], [0]>} : vector<8x8x8xbf16>, vector<8x8x8xbf16>, vector<8x8x8xf32> -> vector<8x8x8xf32>
    "tpu.trace_stop"() : () -> ()
    %74 = vector.shape_cast %73 : vector<8x8x8xf32> to vector<2x4x8x8xf32>
    %75 = tpu.transpose %74, [0, 2, 1, 3] : vector<2x4x8x8xf32> -> vector<2x8x4x8xf32>
    %76 = vector.shape_cast %75 : vector<2x8x4x8xf32> to vector<16x32xf32>
    %77 = arith.truncf %76 : vector<16x32xf32> to vector<16x32xbf16>
    %78 = vector.extract_strided_slice %3 {offsets = [0, 96], sizes = [32, 32], strides = [1, 1]} : vector<32x128xbf16> to vector<32x32xbf16>
    %cst_22 = arith.constant dense<0.000000e+00> : vector<16x32xf32>
    %79 = tpu.matmul %77, %78, %cst_22 {dimension_numbers = #tpu.dot_dimension_numbers<[1], [0], [0], [1], [0, 0, 1, 1], [], []>} : vector<16x32xbf16>, vector<32x32xbf16>, vector<16x32xf32> -> vector<16x32xf32>
    %80 = arith.addf %1, %79 : vector<16x32xf32>
    %81 = vector.extract_strided_slice %7 {offsets = [3, 0], sizes = [1, 32], strides = [1, 1]} : vector<12x128xf32> to vector<1x32xf32>
    %82 = vector.broadcast %81 : vector<1x32xf32> to vector<16x32xf32>
    %83 = arith.addf %80, %82 : vector<16x32xf32>
    %cst_23 = arith.constant dense<0.000000e+00> : vector<16xf32>
    %84 = vector.multi_reduction <add>, %83, %cst_23 [1] : vector<16x32xf32> to vector<16xf32>
    %85 = vector.shape_cast %84 : vector<16xf32> to vector<16x1xf32>
    %cst_24 = arith.constant 3.200000e+01 : f32
    %86 = vector.broadcast %cst_24 : f32 to vector<16x1xf32>
    %87 = arith.divf %85, %86 : vector<16x1xf32>
    %88 = vector.broadcast %87 : vector<16x1xf32> to vector<16x32xf32>
    %89 = arith.subf %83, %88 : vector<16x32xf32>
    %90 = arith.mulf %89, %89 : vector<16x32xf32>
    %cst_25 = arith.constant dense<0.000000e+00> : vector<16xf32>
    %91 = vector.multi_reduction <add>, %90, %cst_25 [1] : vector<16x32xf32> to vector<16xf32>
    %92 = vector.shape_cast %91 : vector<16xf32> to vector<16x1xf32>
    %cst_26 = arith.constant 3.200000e+01 : f32
    %93 = vector.broadcast %cst_26 : f32 to vector<16x1xf32>
    %94 = arith.divf %92, %93 : vector<16x1xf32>
    %95 = vector.broadcast %87 : vector<16x1xf32> to vector<16x32xf32>
    %96 = arith.subf %83, %95 : vector<16x32xf32>
    %cst_27 = arith.constant 9.99999974E-6 : f32
    %97 = vector.broadcast %cst_27 : f32 to vector<16x1xf32>
    %98 = arith.addf %94, %97 : vector<16x1xf32>
    %99 = math.rsqrt %98 : vector<16x1xf32>
    %100 = vector.broadcast %99 : vector<16x1xf32> to vector<16x32xf32>
    %101 = arith.mulf %96, %100 : vector<16x32xf32>
    %102 = vector.extract_strided_slice %7 {offsets = [4, 0], sizes = [1, 32], strides = [1, 1]} : vector<12x128xf32> to vector<1x32xf32>
    %103 = vector.broadcast %102 : vector<1x32xf32> to vector<16x32xf32>
    %104 = arith.mulf %101, %103 : vector<16x32xf32>
    %105 = vector.extract_strided_slice %7 {offsets = [5, 0], sizes = [1, 32], strides = [1, 1]} : vector<12x128xf32> to vector<1x32xf32>
    %106 = vector.broadcast %105 : vector<1x32xf32> to vector<16x32xf32>
    %107 = arith.addf %104, %106 : vector<16x32xf32>
    %108 = arith.truncf %107 : vector<16x32xf32> to vector<16x32xbf16>
    %cst_28 = arith.constant dense<0.000000e+00> : vector<16x128xf32>
    %109 = tpu.matmul %108, %4, %cst_28 {dimension_numbers = #tpu.dot_dimension_numbers<[1], [0], [0], [1], [0, 0, 1, 1], [], []>} : vector<16x32xbf16>, vector<32x128xbf16>, vector<16x128xf32> -> vector<16x128xf32>
    %110 = vector.extract_strided_slice %7 {offsets = [6, 0], sizes = [1, 128], strides = [1, 1]} : vector<12x128xf32> to vector<1x128xf32>
    %111 = vector.broadcast %110 : vector<1x128xf32> to vector<16x128xf32>
    %112 = arith.addf %109, %111 : vector<16x128xf32>
    %113 = arith.truncf %2 : vector<16x32xf32> to vector<16x32xbf16>
    %cst_29 = arith.constant dense<0.000000e+00> : vector<16x128xf32>
    %114 = tpu.matmul %113, %4, %cst_29 {dimension_numbers = #tpu.dot_dimension_numbers<[1], [0], [0], [1], [0, 0, 1, 1], [], []>} : vector<16x32xbf16>, vector<32x128xbf16>, vector<16x128xf32> -> vector<16x128xf32>
    %115 = vector.extract_strided_slice %7 {offsets = [6, 0], sizes = [1, 128], strides = [1, 1]} : vector<12x128xf32> to vector<1x128xf32>
    %116 = vector.broadcast %115 : vector<1x128xf32> to vector<16x128xf32>
    %117 = arith.addf %114, %116 : vector<16x128xf32>
    %118 = vector.extract_strided_slice %112 {offsets = [0, 0], sizes = [16, 32], strides = [1, 1]} : vector<16x128xf32> to vector<16x32xf32>
    %119 = vector.extract_strided_slice %117 {offsets = [0, 32], sizes = [16, 32], strides = [1, 1]} : vector<16x128xf32> to vector<16x32xf32>
    %120 = vector.extract_strided_slice %117 {offsets = [0, 64], sizes = [16, 32], strides = [1, 1]} : vector<16x128xf32> to vector<16x32xf32>
    %121 = vector.shape_cast %118 : vector<16x32xf32> to vector<2x8x4x8xf32>
    %122 = tpu.transpose %121, [0, 2, 1, 3] : vector<2x8x4x8xf32> -> vector<2x4x8x8xf32>
    %123 = vector.shape_cast %122 : vector<2x4x8x8xf32> to vector<8x8x8xf32>
    %124 = vector.shape_cast %119 : vector<16x32xf32> to vector<2x8x4x8xf32>
    %125 = tpu.transpose %124, [0, 2, 1, 3] : vector<2x8x4x8xf32> -> vector<2x4x8x8xf32>
    %126 = vector.shape_cast %125 : vector<2x4x8x8xf32> to vector<8x8x8xf32>
    %127 = vector.shape_cast %120 : vector<16x32xf32> to vector<2x8x4x8xf32>
    %128 = tpu.transpose %127, [0, 2, 1, 3] : vector<2x8x4x8xf32> -> vector<2x4x8x8xf32>
    %129 = vector.shape_cast %128 : vector<2x4x8x8xf32> to vector<8x8x8xf32>
    %130 = arith.truncf %123 : vector<8x8x8xf32> to vector<8x8x8xbf16>
    %131 = arith.truncf %126 : vector<8x8x8xf32> to vector<8x8x8xbf16>
    "tpu.trace_start"() <{level = 10 : i32, message = "bqd,bkd->bqk"}> : () -> ()
    %cst_30 = arith.constant dense<0.000000e+00> : vector<8x8x8xf32>
    %132 = tpu.matmul %130, %131, %cst_30 {dimension_numbers = #tpu.dot_dimension_numbers<[2], [2], [1], [1], [0, 0, 0, 1, 1, 1], [0], [0]>} : vector<8x8x8xbf16>, vector<8x8x8xbf16>, vector<8x8x8xf32> -> vector<8x8x8xf32>
    "tpu.trace_stop"() : () -> ()
    %cst_31 = arith.constant dense<0xFF800000> : vector<8x8xf32>
    %133 = vector.multi_reduction <maximumf>, %132, %cst_31 [2] : vector<8x8x8xf32> to vector<8x8xf32>
    %134 = vector.shape_cast %133 : vector<8x8xf32> to vector<8x8x1xf32>
    %135 = vector.broadcast %134 : vector<8x8x1xf32> to vector<8x8x8xf32>
    %136 = arith.subf %132, %135 : vector<8x8x8xf32>
    %137 = math.exp %136 : vector<8x8x8xf32>
    %cst_32 = arith.constant dense<0.000000e+00> : vector<8x8xf32>
    %138 = vector.multi_reduction <add>, %137, %cst_32 [2] : vector<8x8x8xf32> to vector<8x8xf32>
    %139 = vector.shape_cast %138 : vector<8x8xf32> to vector<8x8x1xf32>
    %140 = tpu.reciprocal %139 {approx = true} : vector<8x8x1xf32> -> vector<8x8x1xf32>
    %141 = vector.broadcast %140 : vector<8x8x1xf32> to vector<8x8x8xf32>
    %142 = arith.mulf %137, %141 : vector<8x8x8xf32>
    %143 = arith.truncf %142 : vector<8x8x8xf32> to vector<8x8x8xbf16>
    %144 = arith.truncf %129 : vector<8x8x8xf32> to vector<8x8x8xbf16>
    "tpu.trace_start"() <{level = 10 : i32, message = "bqk,bkd->bqd"}> : () -> ()
    %cst_33 = arith.constant dense<0.000000e+00> : vector<8x8x8xf32>
    %145 = tpu.matmul %143, %144, %cst_33 {dimension_numbers = #tpu.dot_dimension_numbers<[2], [1], [1], [2], [0, 0, 0, 1, 1, 2], [0], [0]>} : vector<8x8x8xbf16>, vector<8x8x8xbf16>, vector<8x8x8xf32> -> vector<8x8x8xf32>
    "tpu.trace_stop"() : () -> ()
    %146 = vector.shape_cast %145 : vector<8x8x8xf32> to vector<2x4x8x8xf32>
    %147 = tpu.transpose %146, [0, 2, 1, 3] : vector<2x4x8x8xf32> -> vector<2x8x4x8xf32>
    %148 = vector.shape_cast %147 : vector<2x8x4x8xf32> to vector<16x32xf32>
    %149 = arith.truncf %148 : vector<16x32xf32> to vector<16x32xbf16>
    %150 = vector.extract_strided_slice %4 {offsets = [0, 96], sizes = [32, 32], strides = [1, 1]} : vector<32x128xbf16> to vector<32x32xbf16>
    %cst_34 = arith.constant dense<0.000000e+00> : vector<16x32xf32>
    %151 = tpu.matmul %149, %150, %cst_34 {dimension_numbers = #tpu.dot_dimension_numbers<[1], [0], [0], [1], [0, 0, 1, 1], [], []>} : vector<16x32xbf16>, vector<32x32xbf16>, vector<16x32xf32> -> vector<16x32xf32>
    %152 = arith.addf %83, %151 : vector<16x32xf32>
    %153 = vector.extract_strided_slice %7 {offsets = [7, 0], sizes = [1, 32], strides = [1, 1]} : vector<12x128xf32> to vector<1x32xf32>
    %154 = vector.broadcast %153 : vector<1x32xf32> to vector<16x32xf32>
    %155 = arith.addf %152, %154 : vector<16x32xf32>
    %cst_35 = arith.constant dense<0.000000e+00> : vector<16xf32>
    %156 = vector.multi_reduction <add>, %155, %cst_35 [1] : vector<16x32xf32> to vector<16xf32>
    %157 = vector.shape_cast %156 : vector<16xf32> to vector<16x1xf32>
    %cst_36 = arith.constant 3.200000e+01 : f32
    %158 = vector.broadcast %cst_36 : f32 to vector<16x1xf32>
    %159 = arith.divf %157, %158 : vector<16x1xf32>
    %160 = vector.broadcast %159 : vector<16x1xf32> to vector<16x32xf32>
    %161 = arith.subf %155, %160 : vector<16x32xf32>
    %162 = arith.mulf %161, %161 : vector<16x32xf32>
    %cst_37 = arith.constant dense<0.000000e+00> : vector<16xf32>
    %163 = vector.multi_reduction <add>, %162, %cst_37 [1] : vector<16x32xf32> to vector<16xf32>
    %164 = vector.shape_cast %163 : vector<16xf32> to vector<16x1xf32>
    %cst_38 = arith.constant 3.200000e+01 : f32
    %165 = vector.broadcast %cst_38 : f32 to vector<16x1xf32>
    %166 = arith.divf %164, %165 : vector<16x1xf32>
    %167 = vector.broadcast %159 : vector<16x1xf32> to vector<16x32xf32>
    %168 = arith.subf %155, %167 : vector<16x32xf32>
    %cst_39 = arith.constant 9.99999974E-6 : f32
    %169 = vector.broadcast %cst_39 : f32 to vector<16x1xf32>
    %170 = arith.addf %166, %169 : vector<16x1xf32>
    %171 = math.rsqrt %170 : vector<16x1xf32>
    %172 = vector.broadcast %171 : vector<16x1xf32> to vector<16x32xf32>
    %173 = arith.mulf %168, %172 : vector<16x32xf32>
    %174 = vector.extract_strided_slice %7 {offsets = [8, 0], sizes = [1, 32], strides = [1, 1]} : vector<12x128xf32> to vector<1x32xf32>
    %175 = vector.broadcast %174 : vector<1x32xf32> to vector<16x32xf32>
    %176 = arith.mulf %173, %175 : vector<16x32xf32>
    %177 = vector.extract_strided_slice %7 {offsets = [9, 0], sizes = [1, 32], strides = [1, 1]} : vector<12x128xf32> to vector<1x32xf32>
    %178 = vector.broadcast %177 : vector<1x32xf32> to vector<16x32xf32>
    %179 = arith.addf %176, %178 : vector<16x32xf32>
    %180 = arith.truncf %179 : vector<16x32xf32> to vector<16x32xbf16>
    %cst_40 = arith.constant dense<0.000000e+00> : vector<16x128xf32>
    %181 = tpu.matmul %180, %5, %cst_40 {dimension_numbers = #tpu.dot_dimension_numbers<[1], [0], [0], [1], [0, 0, 1, 1], [], []>} : vector<16x32xbf16>, vector<32x128xbf16>, vector<16x128xf32> -> vector<16x128xf32>
    %182 = vector.extract_strided_slice %7 {offsets = [10, 0], sizes = [1, 128], strides = [1, 1]} : vector<12x128xf32> to vector<1x128xf32>
    %183 = vector.broadcast %182 : vector<1x128xf32> to vector<16x128xf32>
    %184 = arith.addf %181, %183 : vector<16x128xf32>
    %cst_41 = arith.constant 0.000000e+00 : f32
    %185 = vector.broadcast %cst_41 : f32 to vector<16x128xf32>
    %186 = arith.maximumf %184, %185 : vector<16x128xf32>
    %187 = arith.truncf %186 : vector<16x128xf32> to vector<16x128xbf16>
    %cst_42 = arith.constant dense<0.000000e+00> : vector<16x32xf32>
    %188 = tpu.matmul %187, %6, %cst_42 {dimension_numbers = #tpu.dot_dimension_numbers<[1], [0], [0], [1], [0, 0, 1, 1], [], []>} : vector<16x128xbf16>, vector<128x32xbf16>, vector<16x32xf32> -> vector<16x32xf32>
    %189 = vector.extract_strided_slice %7 {offsets = [11, 0], sizes = [1, 32], strides = [1, 1]} : vector<12x128xf32> to vector<1x32xf32>
    %190 = vector.broadcast %189 : vector<1x32xf32> to vector<16x32xf32>
    %191 = arith.addf %188, %190 : vector<16x32xf32>
    %192 = arith.addf %155, %191 : vector<16x32xf32>
    %c0_43 = arith.constant 0 : index
    %c0_44 = arith.constant 0 : index
    %193 = vector.load %arg6[%c0_43, %c0_44] : memref<16x32xf32, #tpu.memory_space<vmem>>, vector<16x32xf32>
    tpu.vector_store %arg6[%c0_43, %c0_44], %192 {strides = array<i32>} : memref<16x32xf32, #tpu.memory_space<vmem>>, vector<16x32xf32>,
    %194 = tpu.concatenate %44, %45, %119, %120 in 1 : vector<16x32xf32>, vector<16x32xf32>, vector<16x32xf32>, vector<16x32xf32> -> vector<16x128xf32>
    %c0_45 = arith.constant 0 : index
    %c0_46 = arith.constant 0 : index
    %195 = vector.load %arg7[%c0_45, %c0_46] : memref<16x128xf32, #tpu.memory_space<vmem>>, vector<16x128xf32>
    tpu.vector_store %arg7[%c0_45, %c0_46], %194 {strides = array<i32>} : memref<16x128xf32, #tpu.memory_space<vmem>>, vector<16x128xf32>,
    return
  }
}

</mosaic_0001>

<bundles_post_ra>
// kernel: _decoder_block_impl.1
= control target key start
LH: loop header
LB: loop body
LE: loop exit
PB: predicated region body
PF: predicated region fallthrough
CT: control target
= control target key end

     0   :  { %vm67_vm0 = vcmask 261120   ;;  %s6440_s0 = inlined_call_operand.vmem [shape: f32[32,32], index: 0, kind: input, shape index: {}]   ;;  %s6441_s1 = inlined_call_operand.vmem [shape: bf16[32,128], index: 1, kind: input, shape index: {}]   ;;  %s6442_s2 = inlined_call_operand.vmem [shape: bf16[32,128], index: 2, kind: input, shape index: {}]   ;;  %s6443_s3 = inlined_call_operand.vmem [shape: bf16[32,128], index: 3, kind: input, shape index: {}]   ;;  %s6444_s4 = inlined_call_operand.vmem [shape: bf16[128,32], index: 4, kind: input, shape index: {}]   ;;  %s6445_s5 = inlined_call_operand.vmem [shape: f32[12,128], index: 5, kind: input, shape index: {}]   ;;  %s6446_s6 = inlined_call_operand.hbm [shape: f32[16,32], index: 6, kind: output, shape index: {0}]   ;;  %s6447_s7 = inlined_call_operand.vmem [shape: f32[16,128], index: 7, kind: output, shape index: {1}]  }
   0x1   :  { %v27_v0 = vld [vmem:[%s6440_s0] sm:$0xff]  ;;  %v28_v1 = vld [vmem:[%s6440_s0 + $0x8] sm:$0xff] }
   0x2   :  { %v68_v2 = vsel %vm67_vm0, %v27_v0, 0.0  ;;  %v71_v3 = vsel %vm67_vm0, %v28_v1, 0.0 }
   0x3   :  { %69 = vadd.xlane.f32.xlu0 %v68_v2 }
   0x7   :  { %72 = vadd.xlane.f32.xlu0 %v71_v3 }
   0x8   :  { %13 = vsyncpa [#allocation3], 0  ;;  %v5246_v14 = vld [vmem:[%s6441_s1] sm:$0xff]   ;;  %v5367_v15 = vmov 0.0   ;;  %vm5368_vm1 = vmmov 0   ;;  %v5247_v16 = vld [vmem:[%s6441_s1 + $0x8] sm:$0xff]   ;;  %v61_v21 = vlaneseq }
   0x9   :  { %4940 = vmatprep.subr.bf16.mxu1 %v5367_v15  ;;  %4944 = vmatprep.mubr.msk.bf16.mxu1 %vm5368_vm1, %v5367_v15  ;;  %v59_v26 = vld [vmem:[%s6445_s5] sm:$0xff]  ;;  %s5369_s11 = smov 112   ;;  %s5370_s12 = smov 120   ;;  %v5373_v53 = vmov 1983009808   ;;  %vm1068_vm2 = vcmask 64512  }
   0xa   :  { %4941 = vmatpush3.bf16.msra.mxu1 %v5246_v14  ;;  %4966 = vmatprep.subr.bf16.mxu0 %v5367_v15  ;;  %v5448_v24 = vshrl.u32 %v61_v21, 7  ;;  %s5371_s13 = smov 104   ;;  %s5372_s14 = smov 96   ;;  %v191_v54 = vunpack.c.l.s4 %v5373_v53  ;;  %v5374_v56 = vmov 1934713408   ;;  %vm1544_vm4 = vcmask 1043456  }
   0xb   :  { %4942 = vmatprep.subr.bf16.mxu1 %v5367_v15  ;;  %4968 = vmatprep.mubr.msk.bf16.mxu0 %vm5368_vm1, %v5367_v15  ;;  %v223_v57 = vunpack.c.l.s4 %v5374_v56  ;;  %s5376_s15 = smov 64   ;;  %s5377_s18 = smov 32   ;;  %vm2208_vm5 = vcmask 130048   ;;  %vm2211_vm6 = vcmask 195584   ;;  %vm4737_vm7 = vcmask 523264  }
   0xc   :  { %v97_v25 = vsub.s32 0, %v5448_v24  ;;  %v103_v30 = vsub.s32 1, %v5448_v24  ;;  %v110_v39 = vsub.s32 2, %v5448_v24  ;;  %v192_v55 = vunpack.c.0.s8 %v191_v54  ;;  %s5378_s19 = smov 16   ;;  %s5379_s20 = smov 8  }
   0xd   :  { %v224_v63 = vunpack.c.0.s8 %v223_v57  ;;  %s5380_s21 = smov 24   ;;  %vm4740_vm8 = vcmask 785408  }
   0xe   :  { %4943 = vmatpush3.bf16.msra.mxu1 %v5247_v16  ;;  %v98_v29 = vrot.slane %v59_v26, %v97_v25  ;;  %v104_v34 = vrot.slane %v59_v26, %v103_v30  ;;  %v111_v40 = vrot.slane %v59_v26, %v110_v39  ;;  %v5514_v60 = vsub.s32 %v192_v55, %v5448_v24 }
   0xf   :  { %4948 = vmatprep.subr.bf16.mxu1 %v5367_v15 }
  0x90   :  { %v70_v4 = vpop.xlane.xlu0 %69 }
  0x91   :  { %v75_v5 = vmul.f32 0.03125, %v70_v4  ;;  %v5525_v4 = vsub.s32 %v224_v63, %v5448_v24 }
  0x93   :  { %v77_v6 = vsub.f32 %v27_v0, %v75_v5 }
  0x94   :  { %v73_v7 = vpop.xlane.xlu0 %72 }
  0x95   :  { %v76_v8 = vmul.f32 0.03125, %v73_v7  ;;  %v79_v9 = vmul.f32 %v77_v6, %v77_v6 }
  0x97   :  { %v78_v10 = vsub.f32 %v28_v1, %v76_v8  ;;  %v81_v11 = vsel %vm67_vm0, %v79_v9, 0.0 }
  0x98   :  { %82 = vadd.xlane.f32.xlu1 %v81_v11 }
  0x99   :  { %v80_v12 = vmul.f32 %v78_v10, %v78_v10 }
  0x9b   :  { %v84_v13 = vsel %vm67_vm0, %v80_v12, 0.0 }
  0x9c   :  { %85 = vadd.xlane.f32.xlu1 %v84_v13 }
 0x125   :  { %v83_v17 = vpop.xlane.xlu1 %82 }
 0x126   :  { %v87_v18 = vmul.f32 0.03125, %v83_v17 }
 0x128   :  { %v89_v19 = vadd.f32 1e-05, %v87_v18 }
 0x129   :  { %v86_v20 = vpop.xlane.xlu1 %85 }
 0x12a   :  { %5260 = vrsqrt.f32 %v89_v19  ;;  %v88_v22 = vmul.f32 0.03125, %v86_v20 }
 0x12c   :  { %v90_v23 = vadd.f32 1e-05, %v88_v22 }
 0x12e   :  { %5262 = vrsqrt.f32 %v90_v23 }
 0x134   :  { %v5261_v27 = vpop.eup %5260 }
 0x135   :  { %v93_v28 = vmul.f32 %v5261_v27, %v77_v6 }
 0x137   :  { %v99_v33 = vmul.f32 %v98_v29, %v93_v28 }
 0x138   :  { %v5263_v31 = vpop.eup %5262 }
 0x139   :  { %v94_v32 = vmul.f32 %v5263_v31, %v78_v10  ;;  %v105_v36 = vadd.f32 %v104_v34, %v99_v33 }
 0x13b   :  { %v100_v35 = vmul.f32 %v98_v29, %v94_v32 }
 0x13d   :  { %v106_v37 = vadd.f32 %v104_v34, %v100_v35 }
 0x13f   :  { %v107_v38 = vpack.c.bf16 %v106_v37, %v105_v36 }
 0x141   :  { %4945 = vmatmul.mubr.msk.bf16.vlgmr.msra.gmra.mrb[0].mxu1 %vm67_vm0, %v107_v38 }
 0x142   :  { %4950 = vmatprep.mubr.msk.bf16.mxu1 %vm5368_vm1, %v5367_v15 }
 0x214   :  { %v161_v41 = vpop.f32.mrb[0].mxu1 }
 0x215   :  { %v5465_v42 = vadd.f32 %v161_v41, %v111_v40  ;;  %v4946_v43 = vpop.f32.mrb[1].mxu1 }
 0x216   :  { %v164_v44 = vpop.f32.mrb[2].mxu1 }
 0x217   :  { %176 = vrot.lane.b32.xlu1 %v5465_v42, %s5369_s11  ;;  %170 = vrot.lane.b32.xlu0 %v5465_v42, %s5370_s12  ;;  %v4947_v45 = vpop.f32.mrb[3].mxu1  ;;  %v5471_v46 = vadd.f32 %v164_v44, %v111_v40 }
 0x21b   :  { %182 = vrot.lane.b32.xlu1 %v5465_v42, %s5371_s13  ;;  %178 = vrot.lane.b32.xlu0 %v5471_v46, %s5369_s11 }
 0x21f   :  { %460 = vrot.lane.b32.xlu0 %v5465_v42, %s5372_s14  ;;  %172 = vrot.lane.b32.xlu1 %v5471_v46, %s5370_s12 }
 0x223   :  { %184 = vrot.lane.b32.xlu1 %v5471_v46, %s5371_s13 }
 0x289   :  { %v5483_v47 = vpop.permute.xlu1 %176  ;;  %v5485_v48 = vpop.permute.xlu0 %170 }
 0x28a   :  { %468 = vrot.lane.b32.xlu0 %v5483_v47, %s5372_s14  ;;  %464 = vrot.lane.b32.xlu1 %v5485_v48, %s5372_s14  ;;  %v188_v61 = vcombine.low %v5465_v42, %v5483_v47  ;;  %v189_v62 = vcombine.high %v5465_v42, %v5483_v47 }
 0x28c   :  { %v196_v2 = vrot.slane %v188_v61, %v5514_v60  ;;  %v203_v3 = vrot.slane %v189_v62, %v5514_v60 }
 0x28d   :  { %v5491_v49 = vpop.permute.xlu1 %182  ;;  %v5497_v50 = vpop.permute.xlu0 %178 }
 0x28e   :  { %462 = vrot.lane.b32.xlu0 %v5471_v46, %s5372_s14  ;;  %472 = vrot.lane.b32.xlu1 %v5491_v49, %s5372_s14  ;;  %v204_v58 = vcombine.low %v5485_v48, %v5491_v49  ;;  %v205_v59 = vcombine.high %v5485_v48, %v5491_v49  ;;  %v256_v20 = vcombine.low %v5471_v46, %v5497_v50 }
 0x28f   :  { %v257_v23 = vcombine.high %v5471_v46, %v5497_v50 }
 0x290   :  { %v212_v0 = vrot.slane %v204_v58, %v5514_v60  ;;  %v219_v1 = vrot.slane %v205_v59, %v5514_v60  ;;  %v264_v34 = vrot.slane %v256_v20, %v5514_v60 }
 0x291   :  { %v5499_v51 = vpop.permute.xlu1 %172  ;;  %v5531_v14 = vpop.permute.xlu0 %460  ;;  %v271_v36 = vrot.slane %v257_v23, %v5514_v60 }
 0x292   :  { %470 = vrot.lane.b32.xlu0 %v5497_v50, %s5372_s14  ;;  %466 = vrot.lane.b32.xlu1 %v5499_v51, %s5372_s14  ;;  %v220_v5 = vcombine.low %v196_v2, %v212_v0  ;;  %v221_v6 = vcombine.high %v196_v2, %v212_v0  ;;  %v236_v7 = vcombine.low %v203_v3, %v219_v1 }
 0x293   :  { %v237_v8 = vcombine.high %v203_v3, %v219_v1 }
 0x294   :  { %v228_v9 = vrot.slane %v220_v5, %v5525_v4  ;;  %v235_v10 = vrot.slane %v221_v6, %v5525_v4  ;;  %v244_v11 = vrot.slane %v236_v7, %v5525_v4 }
 0x295   :  { %v5505_v52 = vpop.permute.xlu1 %184  ;;  %v251_v12 = vrot.slane %v237_v8, %v5525_v4 }
 0x296   :  { %474 = vrot.lane.b32.xlu1 %v5505_v52, %s5372_s14  ;;  %v324_v13 = vcombine.low %v228_v9, %v235_v10  ;;  %v4768_v16 = vcombine.high %v228_v9, %v235_v10  ;;  %v272_v19 = vcombine.low %v5499_v51, %v5505_v52  ;;  %v273_v22 = vcombine.high %v5499_v51, %v5505_v52 }
 0x297   :  { %v340_v17 = vcombine.low %v244_v11, %v251_v12  ;;  %v4769_v18 = vcombine.high %v244_v11, %v251_v12 }
 0x298   :  { %v331_v28 = vrot.slane %v324_v13, %v5514_v60  ;;  %v280_v29 = vrot.slane %v272_v19, %v5514_v60  ;;  %v339_v31 = vrot.slane %v4768_v16, %v5514_v60  ;;  %v287_v35 = vrot.slane %v273_v22, %v5514_v60 }
 0x299   :  { %v347_v32 = vrot.slane %v340_v17, %v5514_v60  ;;  %v355_v33 = vrot.slane %v4769_v18, %v5514_v60 }
 0x29a   :  { %v288_v41 = vcombine.low %v264_v34, %v280_v29  ;;  %v289_v43 = vcombine.high %v264_v34, %v280_v29  ;;  %v356_v45 = vcombine.low %v331_v28, %v339_v31  ;;  %v304_v56 = vcombine.low %v271_v36, %v287_v35 }
 0x29b   :  { %v372_v53 = vcombine.low %v347_v32, %v355_v33  ;;  %v305_v57 = vcombine.high %v271_v36, %v287_v35  ;;  %v357_v58 = vcombine.high %v331_v28, %v339_v31  ;;  %v373_v59 = vcombine.high %v347_v32, %v355_v33 }
 0x29c   :  { %v296_v1 = vrot.slane %v288_v41, %v5525_v4  ;;  %v303_v2 = vrot.slane %v289_v43, %v5525_v4  ;;  %v5560_v5 = vrot.slane %v356_v45, %v5525_v4  ;;  %v312_v12 = vrot.slane %v304_v56, %v5525_v4 }
 0x29d   :  { %v5563_v6 = vrot.slane %v372_v53, %v5525_v4  ;;  %v319_v13 = vrot.slane %v305_v57, %v5525_v4  ;;  %v5568_v16 = vrot.slane %v357_v58, %v5525_v4  ;;  %v5571_v17 = vrot.slane %v373_v59, %v5525_v4 }
 0x29e   :  { %v392_v23 = vcombine.low %v296_v1, %v303_v2 }
 0x29f   :  { %v408_v35 = vcombine.low %v312_v12, %v319_v13  ;;  %v4771_v36 = vcombine.high %v312_v12, %v319_v13 }
 0x2a0   :  { %v5596_v13 = vrot.slane %v392_v23, %v5514_v60 }
 0x2fc   :  { %v469_v26 = vpop.permute.xlu0 %468  ;;  %v465_v27 = vpop.permute.xlu1 %464 }
 0x2fd   :  { %v484_v37 = vcombine.low %v5531_v14, %v469_v26  ;;  %v485_v38 = vcombine.high %v5531_v14, %v469_v26  ;;  %v4770_v26 = vcombine.high %v296_v1, %v303_v2 }
 0x2ff   :  { %v492_v61 = vrot.slane %v484_v37, %v5514_v60  ;;  %v499_v62 = vrot.slane %v485_v38, %v5514_v60 }
 0x300   :  { %v5551_v40 = vpop.permute.xlu0 %462  ;;  %v473_v44 = vpop.permute.xlu1 %472 }
 0x301   :  { %v500_v54 = vcombine.low %v465_v27, %v473_v44  ;;  %v501_v55 = vcombine.high %v465_v27, %v473_v44 }
 0x303   :  { %v508_v63 = vrot.slane %v500_v54, %v5514_v60  ;;  %v515_v0 = vrot.slane %v501_v55, %v5514_v60 }
 0x304   :  { %v467_v3 = vpop.permute.xlu1 %466  ;;  %v471_v11 = vpop.permute.xlu0 %470 }
 0x305   :  { %v516_v7 = vcombine.low %v492_v61, %v508_v63  ;;  %v517_v8 = vcombine.high %v492_v61, %v508_v63  ;;  %v532_v9 = vcombine.low %v499_v62, %v515_v0  ;;  %v533_v10 = vcombine.high %v499_v62, %v515_v0 }
 0x306   :  { %v552_v27 = vcombine.low %v5551_v40, %v471_v11  ;;  %v553_v28 = vcombine.high %v5551_v40, %v471_v11 }
 0x307   :  { %v524_v18 = vrot.slane %v516_v7, %v5525_v4  ;;  %v531_v19 = vrot.slane %v517_v8, %v5525_v4  ;;  %v540_v20 = vrot.slane %v532_v9, %v5525_v4  ;;  %v547_v22 = vrot.slane %v533_v10, %v5525_v4 }
 0x308   :  { %v475_v29 = vpop.permute.xlu1 %474  ;;  %v560_v53 = vrot.slane %v552_v27, %v5514_v60  ;;  %v567_v54 = vrot.slane %v553_v28, %v5514_v60 }
 0x309   :  { %v620_v31 = vcombine.low %v524_v18, %v531_v19  ;;  %v4772_v32 = vcombine.high %v524_v18, %v531_v19  ;;  %v636_v33 = vcombine.low %v540_v20, %v547_v22  ;;  %v4773_v34 = vcombine.high %v540_v20, %v547_v22 }
 0x30a   :  { %v568_v37 = vcombine.low %v467_v3, %v475_v29  ;;  %v569_v38 = vcombine.high %v467_v3, %v475_v29  ;;  %v407_v18 = vrot.slane %v4770_v26, %v5514_v60 }
 0x30b   :  { %v627_v41 = vrot.slane %v620_v31, %v5514_v60  ;;  %v635_v43 = vrot.slane %v4772_v32, %v5514_v60  ;;  %v643_v44 = vrot.slane %v636_v33, %v5514_v60  ;;  %v651_v45 = vrot.slane %v4773_v34, %v5514_v60 }
 0x30c   :  { %v576_v55 = vrot.slane %v568_v37, %v5514_v60  ;;  %v583_v56 = vrot.slane %v569_v38, %v5514_v60  ;;  %v415_v31 = vrot.slane %v408_v35, %v5514_v60  ;;  %v423_v32 = vrot.slane %v4771_v36, %v5514_v60 }
 0x30d   :  { %v652_v57 = vcombine.low %v627_v41, %v635_v43  ;;  %v668_v58 = vcombine.low %v643_v44, %v651_v45  ;;  %v653_v59 = vcombine.high %v627_v41, %v635_v43  ;;  %v669_v61 = vcombine.high %v643_v44, %v651_v45 }
 0x30e   :  { %v584_v62 = vcombine.low %v560_v53, %v576_v55  ;;  %v585_v63 = vcombine.high %v560_v53, %v576_v55  ;;  %v600_v0 = vcombine.low %v567_v54, %v583_v56  ;;  %v601_v1 = vcombine.high %v567_v54, %v583_v56 }
 0x30f   :  { %v660_v2 = vrot.slane %v652_v57, %v5525_v4  ;;  %v676_v3 = vrot.slane %v668_v58, %v5525_v4  ;;  %v667_v7 = vrot.slane %v653_v59, %v5525_v4  ;;  %v683_v8 = vrot.slane %v669_v61, %v5525_v4 }
 0x310   :  { %v592_v9 = vrot.slane %v584_v62, %v5525_v4  ;;  %v599_v10 = vrot.slane %v585_v63, %v5525_v4  ;;  %v608_v11 = vrot.slane %v600_v0, %v5525_v4  ;;  %v615_v12 = vrot.slane %v601_v1, %v5525_v4 }
 0x311   :  { %v684_v19 = vcombine.low %v660_v2, %v676_v3  ;;  %v687_v20 = vcombine.high %v667_v7, %v683_v8  ;;  %v685_v44 = vcombine.high %v660_v2, %v676_v3  ;;  %v388_v53 = vcombine.low %v5560_v5, %v5563_v6 }
 0x312   :  { %v688_v22 = vcombine.low %v592_v9, %v599_v10  ;;  %v4774_v27 = vcombine.high %v592_v9, %v599_v10  ;;  %v704_v28 = vcombine.low %v608_v11, %v615_v12  ;;  %v4775_v29 = vcombine.high %v608_v11, %v615_v12 }
 0x313   :  { %v1060_v33 = vpack.c.bf16 %v684_v19, %v684_v19  ;;  %v1063_v34 = vpack.c.bf16 %v687_v20, %v687_v20  ;;  %v391_v54 = vcombine.high %v5568_v16, %v5571_v17  ;;  %v424_v58 = vcombine.low %v5596_v13, %v407_v18 }
 0x314   :  { %v695_v37 = vrot.slane %v688_v22, %v5514_v60  ;;  %v703_v38 = vrot.slane %v4774_v27, %v5514_v60  ;;  %v711_v23 = vrot.slane %v704_v28, %v5514_v60  ;;  %v719_v26 = vrot.slane %v4775_v29, %v5514_v60 }
 0x315   :  { %v1073_v41 = vsel %vm1068_vm2, %v1060_v33, 0  ;;  %v1211_v43 = vsel %vm1068_vm2, %v1063_v34, 0  ;;  %v440_v59 = vcombine.low %v415_v31, %v423_v32  ;;  %v1061_v61 = vpack.c.bf16 %v685_v44, %v685_v44 }
 0x316   :  { %4949 = vmatpush3.bf16.xpose.msra.mxu1 %v1073_v41  ;;  %4967 = vmatpush3.bf16.xpose.msra.mxu0 %v1211_v43  ;;  %v720_v35 = vcombine.low %v695_v37, %v703_v38  ;;  %v736_v45 = vcombine.low %v711_v23, %v719_v26  ;;  %v721_v36 = vcombine.high %v695_v37, %v703_v38 }
 0x317   :  { %4954 = vmatprep.subr.bf16.mxu1 %v5367_v15  ;;  %4978 = vmatprep.subr.bf16.mxu0 %v5367_v15  ;;  %v737_v55 = vcombine.high %v711_v23, %v719_v26  ;;  %v1052_v1 = vpack.c.bf16 %v388_v53, %v388_v53  ;;  %v1055_v2 = vpack.c.bf16 %v391_v54, %v391_v54  ;;  %v1119_v11 = vsel %vm1068_vm2, %v1061_v61, 0 }
 0x318   :  { %v728_v56 = vrot.slane %v720_v35, %v5525_v4  ;;  %v744_v57 = vrot.slane %v736_v45, %v5525_v4  ;;  %v735_v63 = vrot.slane %v721_v36, %v5525_v4  ;;  %v432_v9 = vrot.slane %v424_v58, %v5525_v4 }
 0x319   :  { %v751_v0 = vrot.slane %v737_v55, %v5525_v4  ;;  %v448_v10 = vrot.slane %v440_v59, %v5525_v4  ;;  %v686_v12 = vcombine.low %v667_v7, %v683_v8  ;;  %v389_v22 = vcombine.high %v5560_v5, %v5563_v6 }
 0x31a   :  { %v753_v62 = vcombine.high %v728_v56, %v744_v57  ;;  %v425_v7 = vcombine.high %v5596_v13, %v407_v18  ;;  %v441_v8 = vcombine.high %v415_v31, %v423_v32  ;;  %v752_v6 = vcombine.low %v728_v56, %v744_v57 }
 0x31b   :  { %v755_v20 = vcombine.high %v735_v63, %v751_v0  ;;  %v457_v27 = vcombine.high %v432_v9, %v448_v10  ;;  %v1062_v28 = vpack.c.bf16 %v686_v12, %v686_v12  ;;  %v1053_v33 = vpack.c.bf16 %v389_v22, %v389_v22 }
 0x31c   :  { %v1065_v3 = vpack.c.bf16 %v753_v62, %v753_v62  ;;  %v439_v37 = vrot.slane %v425_v7, %v5525_v4  ;;  %v455_v38 = vrot.slane %v441_v8, %v5525_v4  ;;  %v390_v13 = vcombine.low %v5568_v16, %v5571_v17 }
 0x31d   :  { %4951 = vmatmul.mubr.msk.bf16.vlgmr.msra.gmra.mrb[4].mxu1 %vm1068_vm2, %v1052_v1  ;;  %4969 = vmatmul.mubr.msk.bf16.vlgmr.msra.gmra.mrb[0].mxu0 %vm1068_vm2, %v1055_v2  ;;  %v1067_v29 = vpack.c.bf16 %v755_v20, %v755_v20  ;;  %v1057_v34 = vpack.c.bf16 %v457_v27, %v457_v27  ;;  %v1165_v5 = vsel %vm1068_vm2, %v1062_v28, 0  ;;  %v1064_v31 = vpack.c.bf16 %v752_v6, %v752_v6 }
 0x31e   :  { %4955 = vmatpush3.bf16.xpose.msra.mxu1 %v1119_v11  ;;  %v1303_v19 = vsel %vm1068_vm2, %v1065_v3, 0  ;;  %4956 = vmatprep.mubr.msk.bf16.mxu1 %vm5368_vm1, %v5367_v15  ;;  %v459_v18 = vcombine.high %v439_v37, %v455_v38  ;;  %v1054_v32 = vpack.c.bf16 %v390_v13, %v390_v13  ;;  %v754_v16 = vcombine.low %v735_v63, %v751_v0 }
 0x31f   :  { %4979 = vmatpush3.bf16.xpose.msra.mxu0 %v1303_v19  ;;  %4980 = vmatprep.mubr.msk.bf16.mxu0 %vm5368_vm1, %v5367_v15  ;;  %v1395_v23 = vsel %vm1068_vm2, %v1067_v29, 0  ;;  %v1257_v41 = vsel %vm1068_vm2, %v1064_v31, 0  ;;  %v456_v17 = vcombine.low %v432_v9, %v448_v10  ;;  %v458_v45 = vcombine.low %v439_v37, %v455_v38 }
 0x320   :  { %4960 = vmatprep.subr.bf16.mxu1 %v5367_v15  ;;  %4990 = vmatprep.subr.bf16.mxu0 %v5367_v15  ;;  %v1059_v26 = vpack.c.bf16 %v459_v18, %v459_v18  ;;  %v1066_v43 = vpack.c.bf16 %v754_v16, %v754_v16  ;;  %v64_v53 = vand.u32 127, %v61_v21  ;;  %v5375_v54 = vmov -1e+09  }
 0x321   :  { %v1056_v44 = vpack.c.bf16 %v456_v17, %v456_v17  ;;  %v1058_v36 = vpack.c.bf16 %v458_v45, %v458_v45 }
 0x322   :  { %v1349_v35 = vsel %vm1068_vm2, %v1066_v43, 0  ;;  %vm65_vm3 = vcmp.ge.s32.totalorder %v5448_v24, %v64_v53 }
 0x323   :  { %v66_v55 = vsel %vm65_vm3, 0.0, %v5375_v54 }
 0x325   :  { %4957 = vmatmul.mubr.msk.bf16.vlgmr.msra.gmra.mrb[8].mxu1 %vm1068_vm2, %v1053_v33 }
 0x326   :  { %4981 = vmatmul.mubr.msk.bf16.vlgmr.msra.gmra.mrb[4].mxu0 %vm1068_vm2, %v1057_v34  ;;  %4961 = vmatpush3.bf16.xpose.msra.mxu1 %v1165_v5 }
 0x327   :  { %4991 = vmatpush3.bf16.xpose.msra.mxu0 %v1395_v23  ;;  %4962 = vmatprep.mubr.msk.bf16.mxu1 %vm5368_vm1, %v5367_v15 }
 0x328   :  { %4992 = vmatprep.mubr.msk.bf16.mxu0 %vm5368_vm1, %v5367_v15  ;;  %4972 = vmatprep.subr.bf16.mxu1 %v5367_v15 }
 0x329   :  { %5002 = vmatprep.subr.bf16.mxu0 %v5367_v15 }
 0x32d   :  { %4963 = vmatmul.mubr.msk.bf16.vlgmr.msra.gmra.mrb[12].mxu1 %vm1068_vm2, %v1054_v32 }
 0x32e   :  { %4993 = vmatmul.mubr.msk.bf16.vlgmr.msra.gmra.mrb[8].mxu0 %vm1068_vm2, %v1059_v26  ;;  %4973 = vmatpush3.bf16.xpose.msra.mxu1 %v1257_v41 }
 0x32f   :  { %4974 = vmatprep.mubr.msk.bf16.mxu1 %vm5368_vm1, %v5367_v15  ;;  %4984 = vmatprep.subr.bf16.mxu1 %v5367_v15 }
 0x330   :  { %5004 = vmatprep.mubr.msk.bf16.mxu0 %vm5368_vm1, %v5367_v15 }
 0x335   :  { %4975 = vmatmul.mubr.msk.bf16.vlgmr.msra.gmra.mrb[16].mxu1 %vm1068_vm2, %v1056_v44 }
 0x336   :  { %4985 = vmatpush3.bf16.xpose.msra.mxu1 %v1349_v35  ;;  %4986 = vmatprep.mubr.msk.bf16.mxu1 %vm5368_vm1, %v5367_v15 }
 0x337   :  { %4996 = vmatprep.subr.bf16.mxu1 %v5367_v15 }
 0x33d   :  { %4987 = vmatmul.mubr.msk.bf16.vlgmr.msra.gmra.mrb[20].mxu1 %vm1068_vm2, %v1058_v36 }
 0x33e   :  { %4998 = vmatprep.mubr.msk.bf16.mxu1 %vm5368_vm1, %v5367_v15 }
 0x3f0   :  { %v1109_v56 = vpop.f32.mrb[4].mxu1  ;;  %v1247_v57 = vpop.f32.mrb[0].mxu0 }
 0x3f1   :  { %v1110_v58 = vadd.f32 %v1109_v56, %v66_v55  ;;  %v4952_v59 = vpop.f32.mrb[5].mxu1  ;;  %v4970_v61 = vpop.f32.mrb[1].mxu0  ;;  %v1248_v0 = vadd.f32 %v1247_v57, %v66_v55 }
 0x3f2   :  { %v1112_v62 = vpop.f32.mrb[6].mxu1  ;;  %v1250_v63 = vpop.f32.mrb[2].mxu0 }
 0x3f3   :  { %v4953_v1 = vpop.f32.mrb[7].mxu1  ;;  %v4971_v2 = vpop.f32.mrb[3].mxu0  ;;  %v1437_v3 = vsel %vm1068_vm2, %v1110_v58, -inf  ;;  %v1446_v9 = vsel %vm1068_vm2, %v1248_v0, -inf }
 0x3f4   :  { %1438 = vmax.xlane.f32.xlu0 %v1437_v3 }
 0x3f8   :  { %1447 = vmax.xlane.f32.xlu0 %v1446_v9  ;;  %v1155_v21 = vpop.f32.mrb[8].mxu1 }
 0x3f9   :  { %v1339_v10 = vpop.f32.mrb[4].mxu0  ;;  %v1156_v11 = vadd.f32 %v1155_v21, %v66_v55  ;;  %v4958_v12 = vpop.f32.mrb[9].mxu1 }
 0x3fa   :  { %v4982_v19 = vpop.f32.mrb[5].mxu0  ;;  %v1158_v20 = vpop.f32.mrb[10].mxu1  ;;  %v1340_v22 = vadd.f32 %v1339_v10, %v66_v55 }
 0x3fb   :  { %v1342_v27 = vpop.f32.mrb[6].mxu0  ;;  %v4959_v7 = vpop.f32.mrb[11].mxu1  ;;  %v1440_v8 = vsel %vm1068_vm2, %v1156_v11, -inf }
 0x3fc   :  { %v4983_v28 = vpop.f32.mrb[7].mxu0  ;;  %1441 = vmax.xlane.f32.xlu1 %v1440_v8  ;;  %v1452_v29 = vsel %vm1068_vm2, %v1340_v22, -inf }
 0x400   :  { %1453 = vmax.xlane.f32.xlu1 %v1452_v29  ;;  %v1201_v33 = vpop.f32.mrb[12].mxu1 }
 0x401   :  { %v1431_v34 = vpop.f32.mrb[8].mxu0  ;;  %v1202_v37 = vadd.f32 %v1201_v33, %v66_v55  ;;  %v4964_v38 = vpop.f32.mrb[13].mxu1 }
 0x402   :  { %v5669_v5 = vadd.f32 %v1431_v34, %v66_v55  ;;  %v4994_v6 = vpop.f32.mrb[9].mxu0  ;;  %v1204_v23 = vpop.f32.mrb[14].mxu1 }
 0x403   :  { %v1434_v13 = vpop.f32.mrb[10].mxu0  ;;  %v4965_v18 = vpop.f32.mrb[15].mxu1  ;;  %v1443_v31 = vsel %vm1068_vm2, %v1202_v37, -inf }
 0x404   :  { %v4995_v32 = vpop.f32.mrb[11].mxu0  ;;  %v1458_v26 = vsel %vm1068_vm2, %v5669_v5, -inf  ;;  %1444 = vmax.xlane.f32.xlu0 %v1443_v31 }
 0x405   :  { %1459 = vmax.xlane.f32.xlu1 %v1458_v26 }
 0x408   :  { %v1293_v41 = vpop.f32.mrb[16].mxu1 }
 0x409   :  { %v1294_v16 = vadd.f32 %v1293_v41, %v66_v55  ;;  %v4976_v17 = vpop.f32.mrb[17].mxu1 }
 0x40a   :  { %v1296_v43 = vpop.f32.mrb[18].mxu1 }
 0x40b   :  { %v4977_v44 = vpop.f32.mrb[19].mxu1  ;;  %v1449_v35 = vsel %vm1068_vm2, %v1294_v16, -inf }
 0x40c   :  { %1450 = vmax.xlane.f32.xlu0 %v1449_v35 }
 0x410   :  { %v1385_v45 = vpop.f32.mrb[20].mxu1 }
 0x411   :  { %v5675_v36 = vadd.f32 %v1385_v45, %v66_v55  ;;  %v4988_v53 = vpop.f32.mrb[21].mxu1 }
 0x412   :  { %v1388_v54 = vpop.f32.mrb[22].mxu1 }
 0x413   :  { %v4989_v56 = vpop.f32.mrb[23].mxu1  ;;  %v1455_v57 = vsel %vm1068_vm2, %v5675_v36, -inf }
 0x414   :  { %1456 = vmax.xlane.f32.xlu0 %v1455_v57 }
 0x416   :  { %760 = vrot.lane.b32.xlu1 %v5485_v48, %s5376_s15 }
 0x41a   :  { %764 = vrot.lane.b32.xlu1 %v5483_v47, %s5376_s15 }
 0x41e   :  { %768 = vrot.lane.b32.xlu1 %v5491_v49, %s5376_s15 }
 0x42a   :  { %756 = vrot.lane.b32.xlu0 %v5465_v42, %s5376_s15 }
 0x481   :  { %v1439_v55 = vpop.xlane.xlu0 %1438 }
 0x482   :  { %v1461_v59 = vsub.f32 %v1110_v58, %v1439_v55 }
 0x484   :  { %v1469_v61 = vmul.f32 1.442695, %v1461_v59 }
 0x485   :  { %v1448_v62 = vpop.xlane.xlu0 %1447 }
 0x486   :  { %5264 = vpow2.f32 %v1469_v61  ;;  %v1464_v63 = vsub.f32 %v1248_v0, %v1448_v62 }
 0x488   :  { %v1475_v1 = vmul.f32 1.442695, %v1464_v63 }
 0x489   :  { %v1442_v2 = vpop.xlane.xlu1 %1441 }
 0x48a   :  { %5266 = vpow2.f32 %v1475_v1  ;;  %v1462_v3 = vsub.f32 %v1156_v11, %v1442_v2 }
 0x48c   :  { %v1471_v48 = vmul.f32 1.442695, %v1462_v3 }
 0x48d   :  { %v1454_v9 = vpop.xlane.xlu1 %1453 }
 0x48e   :  { %5268 = vpow2.f32 %v1471_v48  ;;  %v1466_v47 = vsub.f32 %v1340_v22, %v1454_v9 }
 0x490   :  { %v5687_v21 = vpop.eup %5264  ;;  %v1479_v49 = vmul.f32 1.442695, %v1466_v47 }
 0x491   :  { %v1445_v10 = vpop.xlane.xlu0 %1444  ;;  %v1485_v42 = vsel %vm1068_vm2, %v5687_v21, 0.0 }
 0x492   :  { %5270 = vpow2.f32 %v1479_v49  ;;  %v5691_v58 = vpop.xlane.xlu1 %1459  ;;  %v1463_v12 = vsub.f32 %v1202_v37, %v1445_v10  ;;  %1486 = vadd.xlane.f32.xlu0 %v1485_v42 }
 0x494   :  { %v5693_v0 = vpop.eup %5266  ;;  %v1473_v19 = vmul.f32 1.442695, %v1463_v12 }
 0x495   :  { %v1494_v11 = vsel %vm1068_vm2, %v5693_v0, 0.0 }
 0x496   :  { %5272 = vpow2.f32 %v1473_v19  ;;  %v761_v20 = vpop.permute.xlu1 %760  ;;  %1495 = vadd.xlane.f32.xlu1 %v1494_v11 }
 0x498   :  { %v5697_v22 = vpop.eup %5268 }
 0x499   :  { %v1451_v27 = vpop.xlane.xlu0 %1450  ;;  %v1488_v7 = vsel %vm1068_vm2, %v5697_v22, 0.0 }
 0x49a   :  { %v1465_v8 = vsub.f32 %v1294_v16, %v1451_v27  ;;  %1489 = vadd.xlane.f32.xlu1 %v1488_v7  ;;  %v765_v28 = vpop.permute.xlu1 %764 }
 0x49c   :  { %v5701_v29 = vpop.eup %5270  ;;  %v1477_v33 = vmul.f32 1.442695, %v1465_v8 }
 0x49d   :  { %v1500_v34 = vsel %vm1068_vm2, %v5701_v29, 0.0 }
 0x49e   :  { %5274 = vpow2.f32 %v1477_v33  ;;  %1501 = vadd.xlane.f32.xlu0 %v1500_v34  ;;  %v769_v38 = vpop.permute.xlu1 %768 }
 0x49f   :  { %v796_v13 = vcombine.low %v761_v20, %v769_v38  ;;  %v797_v18 = vcombine.high %v761_v20, %v769_v38 }
 0x4a0   :  { %v5705_v37 = vpop.eup %5272 }
 0x4a1   :  { %v1457_v6 = vpop.xlane.xlu0 %1456  ;;  %v1491_v23 = vsel %vm1068_vm2, %v5705_v37, 0.0  ;;  %v804_v16 = vrot.slane %v796_v13, %v5514_v60  ;;  %v811_v17 = vrot.slane %v797_v18, %v5514_v60 }
 0x4a2   :  { %1492 = vadd.xlane.f32.xlu0 %v1491_v23  ;;  %v1467_v13 = vsub.f32 %v5675_v36, %v1457_v6 }
 0x4a4   :  { %v1481_v18 = vmul.f32 1.442695, %v1467_v13 }
 0x4a5   :  { %v757_v31 = vpop.permute.xlu0 %756 }
 0x4a6   :  { %v780_v32 = vcombine.low %v757_v31, %v765_v28  ;;  %v781_v26 = vcombine.high %v757_v31, %v765_v28 }
 0x4a8   :  { %v5709_v41 = vpop.eup %5274  ;;  %v788_v43 = vrot.slane %v780_v32, %v5514_v60  ;;  %v795_v44 = vrot.slane %v781_v26, %v5514_v60 }
 0x4a9   :  { %v1497_v35 = vsel %vm1068_vm2, %v5709_v41, 0.0 }
 0x4aa   :  { %v812_v45 = vcombine.low %v788_v43, %v804_v16  ;;  %v813_v53 = vcombine.high %v788_v43, %v804_v16  ;;  %v828_v54 = vcombine.low %v795_v44, %v811_v17  ;;  %v829_v56 = vcombine.high %v795_v44, %v811_v17  ;;  %1498 = vadd.xlane.f32.xlu0 %v1497_v35 }
 0x4ab   :  { %762 = vrot.lane.b32.xlu1 %v5499_v51, %s5376_s15 }
 0x4ac   :  { %v820_v57 = vrot.slane %v812_v45, %v5525_v4  ;;  %v827_v55 = vrot.slane %v813_v53, %v5525_v4  ;;  %v836_v59 = vrot.slane %v828_v54, %v5525_v4  ;;  %v843_v61 = vrot.slane %v829_v56, %v5525_v4 }
 0x4ae   :  { %v916_v62 = vcombine.low %v820_v57, %v827_v55  ;;  %v4776_v63 = vcombine.high %v820_v57, %v827_v55  ;;  %v932_v1 = vcombine.low %v836_v59, %v843_v61  ;;  %v4777_v2 = vcombine.high %v836_v59, %v843_v61 }
 0x4af   :  { %766 = vrot.lane.b32.xlu1 %v5497_v50, %s5376_s15 }
 0x4b0   :  { %v923_v3 = vrot.slane %v916_v62, %v5514_v60  ;;  %v931_v48 = vrot.slane %v4776_v63, %v5514_v60  ;;  %v939_v51 = vrot.slane %v932_v1, %v5514_v60  ;;  %v947_v9 = vrot.slane %v4777_v2, %v5514_v60 }
 0x4b2   :  { %v948_v47 = vcombine.low %v923_v3, %v931_v48  ;;  %v964_v49 = vcombine.low %v939_v51, %v947_v9  ;;  %v949_v10 = vcombine.high %v923_v3, %v931_v48  ;;  %v965_v42 = vcombine.high %v939_v51, %v947_v9 }
 0x4b3   :  { %770 = vrot.lane.b32.xlu1 %v5505_v52, %s5376_s15  ;;  %v1468_v52 = vsub.f32 %v5669_v5, %v5691_v58 }
 0x4b4   :  { %v956_v12 = vrot.slane %v948_v47, %v5525_v4  ;;  %v972_v19 = vrot.slane %v964_v49, %v5525_v4  ;;  %v963_v50 = vrot.slane %v949_v10, %v5525_v4  ;;  %v979_v11 = vrot.slane %v965_v42, %v5525_v4 }
 0x4b5   :  { %v1483_v23 = vmul.f32 1.442695, %v1468_v52 }
 0x4b6   :  { %v980_v20 = vcombine.low %v956_v12, %v972_v19  ;;  %v981_v27 = vcombine.high %v956_v12, %v972_v19  ;;  %v982_v7 = vcombine.low %v963_v50, %v979_v11  ;;  %v983_v8 = vcombine.high %v963_v50, %v979_v11 }
 0x4b7   :  { %5276 = vpow2.f32 %v1483_v23 }
 0x4b8   :  { %v1533_v28 = vpack.c.bf16 %v980_v20, %v980_v20  ;;  %v1534_v33 = vpack.c.bf16 %v981_v27, %v981_v27  ;;  %5278 = vpow2.f32 %v1481_v18  ;;  %v1535_v44 = vpack.c.bf16 %v982_v7, %v982_v7 }
 0x4b9   :  { %v1536_v57 = vpack.c.bf16 %v983_v8, %v983_v8 }
 0x4ba   :  { %v1546_v34 = vsel %vm1544_vm4, %v1533_v28, 0  ;;  %v1592_v38 = vsel %vm1544_vm4, %v1534_v33, 0  ;;  %v1638_v45 = vsel %vm1544_vm4, %v1535_v44, 0 }
 0x4bb   :  { %4997 = vmatpush3.bf16.msra.mxu1 %v1546_v34  ;;  %5003 = vmatpush3.bf16.msra.mxu0 %v1592_v38  ;;  %v1684_v62 = vsel %vm1544_vm4, %v1536_v57, 0 }
 0x4bc   :  { %5008 = vmatprep.subr.bf16.mxu1 %v5367_v15  ;;  %5014 = vmatprep.subr.bf16.mxu0 %v5367_v15 }
 0x4c0   :  { %758 = vrot.lane.b32.xlu0 %v5471_v46, %s5376_s15 }
 0x4c1   :  { %v5744_v31 = vpop.eup %5276 }
 0x4c2   :  { %v1506_v32 = vsel %vm1068_vm2, %v5744_v31, 0.0  ;;  %v5748_v26 = vpop.eup %5278 }
 0x4c3   :  { %v1503_v46 = vsel %vm1068_vm2, %v5748_v26, 0.0 }
 0x4d7   :  { %1507 = vadd.xlane.f32.xlu1 %v1506_v32 }
 0x4df   :  { %1504 = vadd.xlane.f32.xlu0 %v1503_v46 }
 0x51f   :  { %v1487_v16 = vpop.xlane.xlu0 %1486 }
 0x520   :  { %5280 = vrcp.f32 %v1487_v16 }
 0x523   :  { %v1496_v5 = vpop.xlane.xlu1 %1495 }
 0x527   :  { %v1490_v58 = vpop.xlane.xlu1 %1489 }
 0x528   :  { %5282 = vrcp.f32 %v1490_v58 }
 0x529   :  { %5284 = vrcp.f32 %v1496_v5 }
 0x52a   :  { %v5281_v36 = vpop.eup %5280 }
 0x52b   :  { %v1517_v6 = vmul.f32 %v5281_v36, %v5687_v21  ;;  %v763_v17 = vpop.permute.xlu1 %762  ;;  %v1502_v43 = vpop.xlane.xlu0 %1501 }
 0x52d   :  { %v1525_v35 = vpack.c.bf16 %v1517_v6, %v1517_v6 }
 0x52f   :  { %4999 = vmatmul.mubr.msk.bf16.vlgmr.msra.gmra.mrb[24].mxu1 %vm1068_vm2, %v1525_v35  ;;  %v1493_v53 = vpop.xlane.xlu0 %1492  ;;  %v767_v54 = vpop.permute.xlu1 %766 }
 0x530   :  { %5009 = vmatpush3.bf16.msra.mxu1 %v1638_v45  ;;  %5286 = vrcp.f32 %v1493_v53  ;;  %5010 = vmatprep.mubr.msk.bf16.mxu1 %vm5368_vm1, %v5367_v15 }
 0x531   :  { %5020 = vmatprep.subr.bf16.mxu1 %v5367_v15  ;;  %5288 = vrcp.f32 %v1502_v43 }
 0x532   :  { %v5283_v56 = vpop.eup %5282 }
 0x533   :  { %v1518_v21 = vmul.f32 %v5283_v56, %v5697_v22  ;;  %v5285_v59 = vpop.eup %5284  ;;  %v771_v61 = vpop.permute.xlu1 %770 }
 0x534   :  { %v1520_v1 = vmul.f32 %v5285_v59, %v5693_v0  ;;  %v864_v3 = vcombine.low %v763_v17, %v771_v61  ;;  %v865_v22 = vcombine.high %v763_v17, %v771_v61 }
 0x535   :  { %v1526_v55 = vpack.c.bf16 %v1518_v21, %v1518_v21 }
 0x536   :  { %v1528_v10 = vpack.c.bf16 %v1520_v1, %v1520_v1  ;;  %v872_v42 = vrot.slane %v864_v3, %v5514_v60  ;;  %v879_v12 = vrot.slane %v865_v22, %v5514_v60 }
 0x537   :  { %5005 = vmatmul.mubr.msk.bf16.vlgmr.msra.gmra.mrb[12].mxu0 %vm1068_vm2, %v1526_v55  ;;  %v1499_v63 = vpop.xlane.xlu0 %1498 }
 0x538   :  { %5015 = vmatpush3.bf16.msra.mxu0 %v1684_v62  ;;  %5016 = vmatprep.mubr.msk.bf16.mxu0 %vm5368_vm1, %v5367_v15  ;;  %5290 = vrcp.f32 %v1499_v63 }
 0x539   :  { %5026 = vmatprep.subr.bf16.mxu0 %v5367_v15 }
 0x53a   :  { %v5287_v2 = vpop.eup %5286 }
 0x53b   :  { %v1519_v48 = vmul.f32 %v5287_v2, %v5705_v37  ;;  %v759_v51 = vpop.permute.xlu0 %758  ;;  %v5289_v36 = vpop.eup %5288 }
 0x53c   :  { %v848_v9 = vcombine.low %v759_v51, %v767_v54  ;;  %v849_v47 = vcombine.high %v759_v51, %v767_v54  ;;  %v1522_v21 = vmul.f32 %v5289_v36, %v5701_v29 }
 0x53d   :  { %v1527_v49 = vpack.c.bf16 %v1519_v48, %v1519_v48 }
 0x53e   :  { %v856_v19 = vrot.slane %v848_v9, %v5514_v60  ;;  %v863_v0 = vrot.slane %v849_v47, %v5514_v60  ;;  %v1530_v3 = vpack.c.bf16 %v1522_v21, %v1522_v21 }
 0x53f   :  { %5011 = vmatmul.mubr.msk.bf16.vlgmr.msra.gmra.mrb[28].mxu1 %vm1068_vm2, %v1527_v49  ;;  %5017 = vmatmul.mubr.msk.bf16.vlgmr.msra.gmra.mrb[16].mxu0 %vm1068_vm2, %v1528_v10 }
 0x540   :  { %v880_v50 = vcombine.low %v856_v19, %v872_v42  ;;  %v881_v37 = vcombine.high %v856_v19, %v872_v42  ;;  %v896_v11 = vcombine.low %v863_v0, %v879_v12  ;;  %v897_v20 = vcombine.high %v863_v0, %v879_v12  ;;  %5022 = vmatprep.mubr.msk.bf16.mxu1 %vm5368_vm1, %v5367_v15  ;;  %v5336_v12 = vld [vmem:[%s6441_s1] sm:$0xff]  }
 0x541   :  { %5028 = vmatprep.mubr.msk.bf16.mxu0 %vm5368_vm1, %v5367_v15  ;;  %2215 = vrot.lane.b32.xlu0 %v5336_v12, %s5377_s18 }
 0x542   :  { %v888_v27 = vrot.slane %v880_v50, %v5525_v4  ;;  %v895_v7 = vrot.slane %v881_v37, %v5525_v4  ;;  %v904_v8 = vrot.slane %v896_v11, %v5525_v4  ;;  %v911_v28 = vrot.slane %v897_v20, %v5525_v4  ;;  %v5291_v35 = vpop.eup %5290 }
 0x543   :  { %v1521_v57 = vmul.f32 %v5291_v35, %v5709_v41 }
 0x544   :  { %v984_v33 = vcombine.low %v888_v27, %v895_v7  ;;  %v4778_v34 = vcombine.high %v888_v27, %v895_v7  ;;  %v1000_v38 = vcombine.low %v904_v8, %v911_v28  ;;  %v4779_v52 = vcombine.high %v904_v8, %v911_v28 }
 0x545   :  { %v1529_v2 = vpack.c.bf16 %v1521_v57, %v1521_v57 }
 0x546   :  { %v991_v23 = vrot.slane %v984_v33, %v5514_v60  ;;  %v999_v13 = vrot.slane %v4778_v34, %v5514_v60  ;;  %v1007_v18 = vrot.slane %v1000_v38, %v5514_v60  ;;  %v1015_v32 = vrot.slane %v4779_v52, %v5514_v60 }
 0x548   :  { %v1016_v46 = vcombine.low %v991_v23, %v999_v13  ;;  %v1032_v16 = vcombine.low %v1007_v18, %v1015_v32  ;;  %v1017_v5 = vcombine.high %v991_v23, %v999_v13  ;;  %v1033_v58 = vcombine.high %v1007_v18, %v1015_v32 }
 0x54a   :  { %v1024_v6 = vrot.slane %v1016_v46, %v5525_v4  ;;  %v1040_v17 = vrot.slane %v1032_v16, %v5525_v4  ;;  %v1031_v43 = vrot.slane %v1017_v5, %v5525_v4  ;;  %v1047_v44 = vrot.slane %v1033_v58, %v5525_v4 }
 0x54c   :  { %v1048_v45 = vcombine.low %v1024_v6, %v1040_v17  ;;  %v1049_v53 = vcombine.high %v1024_v6, %v1040_v17  ;;  %v1050_v54 = vcombine.low %v1031_v43, %v1047_v44  ;;  %v1051_v56 = vcombine.high %v1031_v43, %v1047_v44 }
 0x54e   :  { %v1537_v55 = vpack.c.bf16 %v1048_v45, %v1048_v45  ;;  %v1538_v59 = vpack.c.bf16 %v1049_v53, %v1049_v53  ;;  %v1539_v63 = vpack.c.bf16 %v1050_v54, %v1050_v54  ;;  %v1540_v1 = vpack.c.bf16 %v1051_v56, %v1051_v56 }
 0x550   :  { %v1730_v61 = vsel %vm1544_vm4, %v1537_v55, 0  ;;  %v1776_v62 = vsel %vm1544_vm4, %v1538_v59, 0  ;;  %v1822_v29 = vsel %vm1544_vm4, %v1539_v63, 0  ;;  %v1868_v41 = vsel %vm1544_vm4, %v1540_v1, 0 }
 0x551   :  { %5021 = vmatpush3.bf16.msra.mxu1 %v1730_v61  ;;  %5027 = vmatpush3.bf16.msra.mxu0 %v1776_v62 }
 0x552   :  { %5032 = vmatprep.subr.bf16.mxu1 %v5367_v15  ;;  %5038 = vmatprep.subr.bf16.mxu0 %v5367_v15 }
 0x554   :  { %5023 = vmatmul.mubr.msk.bf16.vlgmr.msra.gmra.mrb[32].mxu1 %vm1068_vm2, %v1529_v2  ;;  %5029 = vmatmul.mubr.msk.bf16.vlgmr.msra.gmra.mrb[20].mxu0 %vm1068_vm2, %v1530_v3 }
 0x555   :  { %5033 = vmatpush3.bf16.msra.mxu1 %v1822_v29  ;;  %5039 = vmatpush3.bf16.msra.mxu0 %v1868_v41 }
 0x556   :  { %5040 = vmatprep.mubr.msk.bf16.mxu0 %vm5368_vm1, %v5367_v15  ;;  %5034 = vmatprep.mubr.msk.bf16.mxu1 %vm5368_vm1, %v5367_v15 }
 0x557   :  { %5044 = vmatprep.subr.bf16.mxu1 %v5367_v15  ;;  %5052 = vmatprep.subr.bf16.mxu0 %v5367_v15 }
 0x564   :  { %v1508_v22 = vpop.xlane.xlu1 %1507 }
 0x565   :  { %5292 = vrcp.f32 %v1508_v22 }
 0x56c   :  { %v1505_v48 = vpop.xlane.xlu0 %1504 }
 0x56d   :  { %5294 = vrcp.f32 %v1505_v48 }
 0x56f   :  { %v5293_v51 = vpop.eup %5292 }
 0x570   :  { %v1524_v9 = vmul.f32 %v5293_v51, %v5744_v31 }
 0x572   :  { %v1532_v47 = vpack.c.bf16 %v1524_v9, %v1524_v9 }
 0x574   :  { %5041 = vmatmul.mubr.msk.bf16.vlgmr.msra.gmra.mrb[24].mxu0 %vm1068_vm2, %v1532_v47 }
 0x575   :  { %5056 = vmatprep.mubr.msk.bf16.mxu0 %vm5368_vm1, %v5367_v15 }
 0x577   :  { %v5295_v49 = vpop.eup %5294 }
 0x578   :  { %v1523_v10 = vmul.f32 %v5295_v49, %v5748_v26 }
 0x57a   :  { %v1531_v42 = vpack.c.bf16 %v1523_v10, %v1523_v10 }
 0x57c   :  { %5035 = vmatmul.mubr.msk.bf16.vlgmr.msra.gmra.mrb[36].mxu1 %vm1068_vm2, %v1531_v42 }
 0x57d   :  { %5048 = vmatprep.mubr.msk.bf16.mxu1 %vm5368_vm1, %v5367_v15 }
 0x602   :  { %v1582_v31 = vpop.f32.mrb[24].mxu1 }
 0x603   :  { %v5000_v19 = vpop.f32.mrb[25].mxu1 }
 0x604   :  { %v1585_v0 = vpop.f32.mrb[26].mxu1 }
 0x605   :  { %v5001_v50 = vpop.f32.mrb[27].mxu1 }
 0x60a   :  { %v1628_v37 = vpop.f32.mrb[12].mxu0 }
 0x60b   :  { %v5006_v11 = vpop.f32.mrb[13].mxu0 }
 0x60c   :  { %v1631_v26 = vpop.f32.mrb[14].mxu0 }
 0x60d   :  { %v5007_v20 = vpop.f32.mrb[15].mxu0 }
 0x612   :  { %v1674_v27 = vpop.f32.mrb[28].mxu1  ;;  %v1720_v7 = vpop.f32.mrb[16].mxu0 }
 0x613   :  { %v1910_v8 = vcombine.low %v1582_v31, %v1674_v27  ;;  %v1911_v28 = vcombine.high %v1582_v31, %v1674_v27  ;;  %v1926_v33 = vcombine.low %v1628_v37, %v1720_v7  ;;  %v1927_v34 = vcombine.high %v1628_v37, %v1720_v7  ;;  %v5012_v38 = vpop.f32.mrb[29].mxu1  ;;  %v5018_v52 = vpop.f32.mrb[17].mxu0 }
 0x614   :  { %v1677_v23 = vpop.f32.mrb[30].mxu1  ;;  %v1723_v13 = vpop.f32.mrb[18].mxu0 }
 0x615   :  { %v1918_v18 = vrot.slane %v1910_v8, %v5514_v60  ;;  %v1925_v32 = vrot.slane %v1911_v28, %v5514_v60  ;;  %v1934_v46 = vrot.slane %v1926_v33, %v5514_v60  ;;  %v1941_v16 = vrot.slane %v1927_v34, %v5514_v60  ;;  %v5013_v5 = vpop.f32.mrb[31].mxu1  ;;  %v5019_v58 = vpop.f32.mrb[19].mxu0 }
 0x616   :  { %v2216_v28 = vpop.permute.xlu0 %2215 }
 0x617   :  { %v1942_v36 = vcombine.low %v1918_v18, %v1934_v46  ;;  %v1943_v6 = vcombine.high %v1918_v18, %v1934_v46  ;;  %v1958_v17 = vcombine.low %v1925_v32, %v1941_v16  ;;  %v1959_v43 = vcombine.high %v1925_v32, %v1941_v16  ;;  %5045 = vmatpush3.bf16.msra.mxu1 %v2216_v28 }
 0x618   :  { %5046 = vmatprep.subr.bf16.mxu1 %v5367_v15 }
 0x619   :  { %v1950_v44 = vrot.slane %v1942_v36, %v5525_v4  ;;  %v1957_v35 = vrot.slane %v1943_v6, %v5525_v4  ;;  %v1966_v45 = vrot.slane %v1958_v17, %v5525_v4  ;;  %v1973_v53 = vrot.slane %v1959_v43, %v5525_v4 }
 0x61b   :  { %v2046_v54 = vcombine.low %v1950_v44, %v1957_v35  ;;  %v4796_v56 = vcombine.high %v1950_v44, %v1957_v35  ;;  %v2062_v21 = vcombine.low %v1966_v45, %v1973_v53  ;;  %v4797_v57 = vcombine.high %v1966_v45, %v1973_v53 }
 0x61d   :  { %v2053_v55 = vrot.slane %v2046_v54, %v5514_v60  ;;  %v2061_v59 = vrot.slane %v4796_v56, %v5514_v60  ;;  %v2069_v61 = vrot.slane %v2062_v21, %v5514_v60  ;;  %v2077_v62 = vrot.slane %v4797_v57, %v5514_v60 }
 0x61f   :  { %v2079_v63 = vcombine.high %v2053_v55, %v2061_v59  ;;  %v2095_v1 = vcombine.high %v2069_v61, %v2077_v62  ;;  %v2078_v2 = vcombine.low %v2053_v55, %v2061_v59  ;;  %v2094_v3 = vcombine.low %v2069_v61, %v2077_v62 }
 0x621   :  { %v5829_v29 = vrot.slane %v2079_v63, %v5525_v4  ;;  %v5832_v41 = vrot.slane %v2095_v1, %v5525_v4  ;;  %v5835_v22 = vrot.slane %v2078_v2, %v5525_v4  ;;  %v5838_v48 = vrot.slane %v2094_v3, %v5525_v4 }
 0x623   :  { %v2112_v51 = vcombine.low %v5829_v29, %v5832_v41  ;;  %v2110_v9 = vcombine.low %v5835_v22, %v5838_v48  ;;  %v2111_v47 = vcombine.high %v5835_v22, %v5838_v48  ;;  %v2113_v49 = vcombine.high %v5829_v29, %v5832_v41 }
 0x627   :  { %v1766_v10 = vpop.f32.mrb[32].mxu1  ;;  %v1812_v42 = vpop.f32.mrb[20].mxu0 }
 0x628   :  { %v5024_v12 = vpop.f32.mrb[33].mxu1  ;;  %v5030_v31 = vpop.f32.mrb[21].mxu0 }
 0x629   :  { %v1769_v19 = vpop.f32.mrb[34].mxu1  ;;  %v1815_v0 = vpop.f32.mrb[22].mxu0 }
 0x62a   :  { %v5025_v50 = vpop.f32.mrb[35].mxu1  ;;  %v5031_v37 = vpop.f32.mrb[23].mxu0 }
 0x62b   :  { %v5337_v37 = vld [vmem:[%s6441_s1 + $0x8] sm:$0xff]  }
 0x647   :  { %v1904_v11 = vpop.f32.mrb[24].mxu0 }
 0x648   :  { %v1994_v26 = vcombine.low %v1812_v42, %v1904_v11  ;;  %v1995_v20 = vcombine.high %v1812_v42, %v1904_v11  ;;  %v5042_v27 = vpop.f32.mrb[25].mxu0 }
 0x649   :  { %v1907_v7 = vpop.f32.mrb[26].mxu0 }
 0x64a   :  { %v5043_v8 = vpop.f32.mrb[27].mxu0  ;;  %v2002_v13 = vrot.slane %v1994_v26, %v5514_v60  ;;  %v2009_v18 = vrot.slane %v1995_v20, %v5514_v60 }
 0x64f   :  { %v1858_v33 = vpop.f32.mrb[36].mxu1 }
 0x650   :  { %v1978_v34 = vcombine.low %v1766_v10, %v1858_v33  ;;  %v1979_v38 = vcombine.high %v1766_v10, %v1858_v33  ;;  %v5036_v52 = vpop.f32.mrb[37].mxu1 }
 0x651   :  { %v1861_v23 = vpop.f32.mrb[38].mxu1 }
 0x652   :  { %v1986_v32 = vrot.slane %v1978_v34, %v5514_v60  ;;  %v1993_v46 = vrot.slane %v1979_v38, %v5514_v60  ;;  %v5037_v16 = vpop.f32.mrb[39].mxu1 }
 0x653   :  { %v2269_v16 = vsub.s32 3, %v5448_v24 }
 0x654   :  { %v2010_v5 = vcombine.low %v1986_v32, %v2002_v13  ;;  %v2011_v58 = vcombine.high %v1986_v32, %v2002_v13  ;;  %v2026_v36 = vcombine.low %v1993_v46, %v2009_v18  ;;  %v2027_v6 = vcombine.high %v1993_v46, %v2009_v18  ;;  %v5249_v13 = vld [vmem:[%s6442_s2 + $0x8] sm:$0xff]   ;;  %v29_v18 = vld [vmem:[%s6440_s0 + $0x10] sm:$0xff]  ;;  %v30_v32 = vld [vmem:[%s6440_s0 + $0x18] sm:$0xff] }
 0x655   :  { %v2372_v46 = vpack.c.bf16 %v30_v32, %v29_v18 }
 0x656   :  { %v2018_v17 = vrot.slane %v2010_v5, %v5525_v4  ;;  %v2025_v43 = vrot.slane %v2011_v58, %v5525_v4  ;;  %v2034_v44 = vrot.slane %v2026_v36, %v5525_v4  ;;  %v2041_v35 = vrot.slane %v2027_v6, %v5525_v4  ;;  %v5912_v5 = vld [vmem:[%s6445_s5] sm:$0xff] }
 0x657   :  { %v2270_v58 = vrot.slane %v5912_v5, %v2269_v16  ;;  %v5339_v6 = vld [vmem:[%s6440_s0] sm:$0xff] }
 0x658   :  { %v2114_v45 = vcombine.low %v2018_v17, %v2025_v43  ;;  %v4798_v53 = vcombine.high %v2018_v17, %v2025_v43  ;;  %v2130_v54 = vcombine.low %v2034_v44, %v2041_v35  ;;  %v4799_v56 = vcombine.high %v2034_v44, %v2041_v35 }
 0x65a   :  { %v2121_v21 = vrot.slane %v2114_v45, %v5514_v60  ;;  %v2129_v57 = vrot.slane %v4798_v53, %v5514_v60  ;;  %v2137_v55 = vrot.slane %v2130_v54, %v5514_v60  ;;  %v2145_v59 = vrot.slane %v4799_v56, %v5514_v60  ;;  %v5340_v45 = vld [vmem:[%s6440_s0 + $0x8] sm:$0xff] }
 0x65c   :  { %v2147_v61 = vcombine.high %v2121_v21, %v2129_v57  ;;  %v2163_v62 = vcombine.high %v2137_v55, %v2145_v59  ;;  %v2146_v63 = vcombine.low %v2121_v21, %v2129_v57  ;;  %v2162_v1 = vcombine.low %v2137_v55, %v2145_v59 }
 0x65d   :  { %v2314_v55 = vsub.s32 6, %v5448_v24 }
 0x65e   :  { %v2161_v2 = vrot.slane %v2147_v61, %v5525_v4  ;;  %v2177_v3 = vrot.slane %v2163_v62, %v5525_v4  ;;  %v2154_v29 = vrot.slane %v2146_v63, %v5525_v4  ;;  %v2170_v41 = vrot.slane %v2162_v1, %v5525_v4 }
 0x65f   :  { %v5933_v59 = vrot.slane %v5912_v5, %v2314_v55 }
 0x660   :  { %v2180_v10 = vcombine.low %v2161_v2, %v2177_v3  ;;  %v2179_v42 = vcombine.high %v2154_v29, %v2170_v41  ;;  %v2178_v12 = vcombine.low %v2154_v29, %v2170_v41  ;;  %v2181_v31 = vcombine.high %v2161_v2, %v2177_v3 }
 0x662   :  { %v5221_v19 = vpack.i.bf16 %v2180_v10, %v2112_v51  ;;  %v5216_v0 = vpack.i.bf16 %v2179_v42, %v2111_v47  ;;  %v5226_v50 = vpack.i.bf16 %v2181_v31, %v2113_v49 }
 0x664   :  { %5222 = vrot.lane.b32.xlu0 %v5221_v19, %s5378_s19  ;;  %5217 = vrot.lane.b32.xlu1 %v5216_v0, %s5379_s20 }
 0x668   :  { %5227 = vrot.lane.b32.xlu1 %v5226_v50, %s5380_s21  ;;  %2217 = vrot.lane.b32.xlu0 %v5337_v37, %s5377_s18 }
 0x6d6   :  { %v5223_v11 = vpop.permute.xlu0 %5222  ;;  %v5218_v26 = vpop.permute.xlu1 %5217 }
 0x6d7   :  { %v5220_v51 = vunpack.i.h.bf16 %v5218_v26  ;;  %v5219_v47 = vunpack.i.l.bf16 %v5218_v26  ;;  %v5225_v49 = vunpack.i.h.bf16 %v5223_v11  ;;  %v5224_v20 = vunpack.i.l.bf16 %v5223_v11 }
 0x6d9   :  { %v2206_v27 = vsel %vm1068_vm2, %v2110_v9, %v5219_v47  ;;  %v2207_v7 = vsel %vm1068_vm2, %v2178_v12, %v5220_v51  ;;  %v5888_v9 = vld [vmem:[%s6442_s2] sm:$0xff]  }
 0x6da   :  { %v5228_v8 = vpop.permute.xlu1 %5227  ;;  %v2218_v28 = vpop.permute.xlu0 %2217  ;;  %v2209_v38 = vsel %vm2208_vm5, %v2206_v27, %v5224_v20  ;;  %v2210_v52 = vsel %vm2208_vm5, %v2207_v7, %v5225_v49  ;;  %5053 = vmatpush3.bf16.msra.mxu0 %v5888_v9 }
 0x6db   :  { %v5230_v33 = vunpack.i.h.bf16 %v5228_v8  ;;  %v5229_v34 = vunpack.i.l.bf16 %v5228_v8  ;;  %5047 = vmatpush3.bf16.msra.mxu1 %v2218_v28  ;;  %5054 = vmatprep.subr.bf16.mxu0 %v5367_v15  ;;  %v2301_v28 = vsub.s32 4, %v5448_v24 }
 0x6dc   :  { %5060 = vmatprep.subr.bf16.mxu1 %v5367_v15 }
 0x6dd   :  { %v2212_v23 = vsel %vm2211_vm6, %v2209_v38, %v5229_v34  ;;  %v2213_v22 = vsel %vm2211_vm6, %v2210_v52, %v5230_v33  ;;  %v2302_v34 = vrot.slane %v5912_v5, %v2301_v28  ;;  %v2307_v52 = vsub.s32 5, %v5448_v24 }
 0x6de   :  { %v2214_v48 = vpack.c.bf16 %v2213_v22, %v2212_v23  ;;  %5055 = vmatpush3.bf16.msra.mxu0 %v5249_v13 }
 0x6df   :  { %5068 = vmatprep.subr.bf16.mxu0 %v5367_v15 }
 0x6e0   :  { %5049 = vmatmul.mubr.msk.bf16.vlgmr.msra.gmra.mrb[40].mxu1 %vm67_vm0, %v2214_v48 }
 0x6e1   :  { %5064 = vmatprep.mubr.msk.bf16.mxu1 %vm5368_vm1, %v5367_v15  ;;  %5061 = vmatpush3.bf16.msra.mxu1 %v5888_v9 }
 0x6e2   :  { %5062 = vmatprep.subr.bf16.mxu1 %v5367_v15 }
 0x6e5   :  { %5063 = vmatpush3.bf16.msra.mxu1 %v5249_v13  ;;  %v2308_v13 = vrot.slane %v5912_v5, %v2307_v52 }
 0x6e6   :  { %5074 = vmatprep.subr.bf16.mxu1 %v5367_v15 }
 0x6e8   :  { %5065 = vmatmul.mubr.msk.bf16.vlgmr.msra.gmra.mrb[44].mxu1 %vm67_vm0, %v2372_v46 }
 0x6e9   :  { %5076 = vmatprep.mubr.msk.bf16.mxu1 %vm5368_vm1, %v5367_v15 }
 0x7b3   :  { %v2258_v36 = vpop.f32.mrb[40].mxu1 }
 0x7b4   :  { %v2265_v17 = vadd.f32 %v5339_v6, %v2258_v36  ;;  %v5050_v43 = vpop.f32.mrb[41].mxu1 }
 0x7b5   :  { %v2261_v44 = vpop.f32.mrb[42].mxu1 }
 0x7b6   :  { %v5920_v35 = vadd.f32 %v2270_v58, %v2265_v17  ;;  %v2266_v53 = vadd.f32 %v5340_v45, %v2261_v44  ;;  %v5051_v54 = vpop.f32.mrb[43].mxu1 }
 0x7b8   :  { %v5925_v56 = vadd.f32 %v2270_v58, %v2266_v53  ;;  %v2273_v21 = vsel %vm67_vm0, %v5920_v35, 0.0 }
 0x7b9   :  { %2274 = vadd.xlane.f32.xlu1 %v2273_v21 }
 0x7ba   :  { %v2276_v57 = vsel %vm67_vm0, %v5925_v56, 0.0 }
 0x7bb   :  { %2277 = vadd.xlane.f32.xlu0 %v2276_v57  ;;  %v2410_v61 = vpop.f32.mrb[44].mxu1 }
 0x7bc   :  { %v5936_v62 = vadd.f32 %v2410_v61, %v5933_v59  ;;  %v5066_v63 = vpop.f32.mrb[45].mxu1 }
 0x7bd   :  { %v2413_v0 = vpop.f32.mrb[46].mxu1 }
 0x7be   :  { %v5949_v50 = vadd.f32 %v2413_v0, %v5933_v59  ;;  %v5067_v37 = vpop.f32.mrb[47].mxu1 }
 0x7ca   :  { %2711 = vrot.lane.b32.xlu1 %v5936_v62, %s5370_s12 }
 0x7ce   :  { %2719 = vrot.lane.b32.xlu1 %v5936_v62, %s5371_s13 }
 0x7d2   :  { %2713 = vrot.lane.b32.xlu1 %v5949_v50, %s5370_s12 }
 0x7d6   :  { %2717 = vrot.lane.b32.xlu1 %v5949_v50, %s5369_s11 }
 0x7da   :  { %2723 = vrot.lane.b32.xlu1 %v5936_v62, %s5372_s14 }
 0x846   :  { %v2275_v1 = vpop.xlane.xlu1 %2274 }
 0x847   :  { %v2279_v2 = vmul.f32 0.03125, %v2275_v1 }
 0x848   :  { %v2278_v3 = vpop.xlane.xlu0 %2277 }
 0x849   :  { %v2281_v29 = vsub.f32 %v5920_v35, %v2279_v2  ;;  %v2280_v41 = vmul.f32 0.03125, %v2278_v3 }
 0x84a   :  { %v5959_v11 = vpop.permute.xlu1 %2711 }
 0x84b   :  { %v2282_v10 = vsub.f32 %v5925_v56, %v2280_v41  ;;  %v2283_v42 = vmul.f32 %v2281_v29, %v2281_v29 }
 0x84d   :  { %v2285_v12 = vsel %vm67_vm0, %v2283_v42, 0.0  ;;  %v2284_v31 = vmul.f32 %v2282_v10, %v2282_v10 }
 0x84e   :  { %2286 = vadd.xlane.f32.xlu0 %v2285_v12  ;;  %v5963_v26 = vpop.permute.xlu1 %2719 }
 0x84f   :  { %v2288_v19 = vsel %vm67_vm0, %v2284_v31, 0.0 }
 0x852   :  { %2289 = vadd.xlane.f32.xlu0 %v2288_v19  ;;  %v5978_v36 = vpop.permute.xlu1 %2713 }
 0x856   :  { %v5982_v17 = vpop.permute.xlu1 %2717 }
 0x85a   :  { %v2724_v44 = vpop.permute.xlu1 %2723 }
 0x868   :  { %2715 = vrot.lane.b32.xlu0 %v5936_v62, %s5369_s11 }
 0x86c   :  { %2721 = vrot.lane.b32.xlu0 %v5949_v50, %s5371_s13 }
 0x870   :  { %2727 = vrot.lane.b32.xlu0 %v5959_v11, %s5372_s14 }
 0x874   :  { %2735 = vrot.lane.b32.xlu0 %v5963_v26, %s5372_s14 }
 0x8db   :  { %v2287_v51 = vpop.xlane.xlu0 %2286 }
 0x8dc   :  { %v2291_v47 = vmul.f32 0.03125, %v2287_v51 }
 0x8de   :  { %v2293_v49 = vadd.f32 1e-05, %v2291_v47 }
 0x8df   :  { %v2290_v20 = vpop.xlane.xlu0 %2289 }
 0x8e0   :  { %5296 = vrsqrt.f32 %v2293_v49  ;;  %v2292_v27 = vmul.f32 0.03125, %v2290_v20 }
 0x8e2   :  { %v2294_v7 = vadd.f32 1e-05, %v2292_v27 }
 0x8e3   :  { %v5967_v8 = vpop.permute.xlu0 %2715 }
 0x8e4   :  { %5298 = vrsqrt.f32 %v2294_v7  ;;  %2731 = vrot.lane.b32.xlu1 %v5967_v8, %s5372_s14 }
 0x8e7   :  { %v5980_v6 = vpop.permute.xlu0 %2721 }
 0x8ea   :  { %v5297_v33 = vpop.eup %5296 }
 0x8eb   :  { %v2297_v38 = vmul.f32 %v5297_v33, %v2281_v29  ;;  %v2728_v43 = vpop.permute.xlu0 %2727 }
 0x8ed   :  { %v2303_v22 = vmul.f32 %v2302_v34, %v2297_v38 }
 0x8ee   :  { %v5299_v23 = vpop.eup %5298 }
 0x8ef   :  { %v2298_v48 = vmul.f32 %v5299_v23, %v2282_v10  ;;  %v2309_v32 = vadd.f32 %v2308_v13, %v2303_v22  ;;  %v2736_v45 = vpop.permute.xlu0 %2735 }
 0x8f0   :  { %v2763_v53 = vcombine.low %v2728_v43, %v2736_v45  ;;  %v2764_v5 = vcombine.high %v2728_v43, %v2736_v45 }
 0x8f1   :  { %v2304_v18 = vmul.f32 %v2302_v34, %v2298_v48 }
 0x8f2   :  { %v2771_v21 = vrot.slane %v2763_v53, %v5514_v60  ;;  %v2778_v57 = vrot.slane %v2764_v5, %v5514_v60 }
 0x8f3   :  { %v2310_v46 = vadd.f32 %v2308_v13, %v2304_v18 }
 0x8f5   :  { %v2311_v58 = vpack.c.bf16 %v2310_v46, %v2309_v32 }
 0x8f7   :  { %5057 = vmatmul.mubr.msk.bf16.vlgmr.msra.gmra.mrb[28].mxu0 %vm67_vm0, %v2311_v58 }
 0x8f8   :  { %5070 = vmatprep.mubr.msk.bf16.mxu0 %vm5368_vm1, %v5367_v15 }
 0x956   :  { %v2732_v54 = vpop.permute.xlu1 %2731 }
 0x957   :  { %v2747_v55 = vcombine.low %v2724_v44, %v2732_v54  ;;  %v2748_v61 = vcombine.high %v2724_v44, %v2732_v54 }
 0x959   :  { %v2755_v63 = vrot.slane %v2747_v55, %v5514_v60  ;;  %v2762_v1 = vrot.slane %v2748_v61, %v5514_v60 }
 0x95b   :  { %v2779_v2 = vcombine.low %v2755_v63, %v2771_v21  ;;  %v2780_v3 = vcombine.high %v2755_v63, %v2771_v21  ;;  %v2795_v29 = vcombine.low %v2762_v1, %v2778_v57  ;;  %v2796_v41 = vcombine.high %v2762_v1, %v2778_v57 }
 0x95d   :  { %v2787_v10 = vrot.slane %v2779_v2, %v5525_v4  ;;  %v2794_v42 = vrot.slane %v2780_v3, %v5525_v4  ;;  %v2803_v12 = vrot.slane %v2795_v29, %v5525_v4  ;;  %v2810_v31 = vrot.slane %v2796_v41, %v5525_v4 }
 0x95f   :  { %v2883_v19 = vcombine.low %v2787_v10, %v2794_v42  ;;  %v4809_v0 = vcombine.high %v2787_v10, %v2794_v42  ;;  %v2899_v37 = vcombine.low %v2803_v12, %v2810_v31  ;;  %v4810_v51 = vcombine.high %v2803_v12, %v2810_v31 }
 0x961   :  { %v2890_v47 = vrot.slane %v2883_v19, %v5514_v60  ;;  %v2898_v49 = vrot.slane %v4809_v0, %v5514_v60  ;;  %v2906_v20 = vrot.slane %v2899_v37, %v5514_v60  ;;  %v2914_v27 = vrot.slane %v4810_v51, %v5514_v60 }
 0x963   :  { %v2915_v7 = vcombine.low %v2890_v47, %v2898_v49  ;;  %v2931_v28 = vcombine.low %v2906_v20, %v2914_v27  ;;  %v2916_v33 = vcombine.high %v2890_v47, %v2898_v49  ;;  %v2932_v34 = vcombine.high %v2906_v20, %v2914_v27 }
 0x965   :  { %v2923_v38 = vrot.slane %v2915_v7, %v5525_v4  ;;  %v2939_v52 = vrot.slane %v2931_v28, %v5525_v4  ;;  %v2930_v23 = vrot.slane %v2916_v33, %v5525_v4  ;;  %v2946_v22 = vrot.slane %v2932_v34, %v5525_v4 }
 0x967   :  { %v2947_v48 = vcombine.low %v2923_v38, %v2939_v52  ;;  %v2948_v13 = vcombine.high %v2923_v38, %v2939_v52  ;;  %v6000_v18 = vcombine.low %v2930_v23, %v2946_v22  ;;  %v6002_v32 = vcombine.high %v2930_v23, %v2946_v22 }
 0x969   :  { %v3323_v46 = vpack.c.bf16 %v2947_v48, %v2947_v48  ;;  %v3324_v58 = vpack.c.bf16 %v2948_v13, %v2948_v13 }
 0x96b   :  { %v3335_v43 = vsel %vm1068_vm2, %v3323_v46, 0  ;;  %v3381_v44 = vsel %vm1068_vm2, %v3324_v58, 0 }
 0x96c   :  { %5069 = vmatpush3.bf16.xpose.msra.mxu0 %v3335_v43  ;;  %5075 = vmatpush3.bf16.xpose.msra.mxu1 %v3381_v44  ;;  %v3325_v44 = vpack.c.bf16 %v6000_v18, %v6000_v18 }
 0x96d   :  { %5080 = vmatprep.subr.bf16.mxu0 %v5367_v15  ;;  %5086 = vmatprep.subr.bf16.mxu1 %v5367_v15 }
 0x9ca   :  { %v2365_v45 = vpop.f32.mrb[28].mxu0 }
 0x9cb   :  { %v2366_v53 = vadd.f32 %v2365_v45, %v5933_v59  ;;  %v5058_v5 = vpop.f32.mrb[29].mxu0  ;;  %v3326_v45 = vpack.c.bf16 %v6002_v32, %v6002_v32 }
 0x9cc   :  { %v2368_v54 = vpop.f32.mrb[30].mxu0 }
 0x9cd   :  { %v5059_v21 = vpop.f32.mrb[31].mxu0  ;;  %2425 = vrot.lane.b32.xlu0 %v2366_v53, %s5369_s11  ;;  %2419 = vrot.lane.b32.xlu1 %v2366_v53, %s5370_s12  ;;  %v6019_v57 = vadd.f32 %v2368_v54, %v5933_v59 }
 0x9d1   :  { %2725 = vrot.lane.b32.xlu0 %v5949_v50, %s5372_s14  ;;  %2431 = vrot.lane.b32.xlu1 %v2366_v53, %s5371_s13 }
 0x9d5   :  { %2729 = vrot.lane.b32.xlu1 %v5978_v36, %s5372_s14  ;;  %2733 = vrot.lane.b32.xlu0 %v5982_v17, %s5372_s14 }
 0x9d9   :  { %2737 = vrot.lane.b32.xlu1 %v5980_v6, %s5372_s14  ;;  %2421 = vrot.lane.b32.xlu0 %v6019_v57, %s5370_s12 }
 0x9dd   :  { %2427 = vrot.lane.b32.xlu1 %v6019_v57, %s5369_s11  ;;  %2433 = vrot.lane.b32.xlu0 %v6019_v57, %s5371_s13 }
 0x9e1   :  { %3019 = vrot.lane.b32.xlu1 %v5936_v62, %s5376_s15 }
 0xa3f   :  { %v2426_v55 = vpop.permute.xlu0 %2425  ;;  %v2420_v61 = vpop.permute.xlu1 %2419 }
 0xa40   :  { %v2437_v63 = vcombine.low %v2366_v53, %v2426_v55  ;;  %v2438_v59 = vcombine.high %v2366_v53, %v2426_v55 }
 0xa42   :  { %v2445_v41 = vrot.slane %v2437_v63, %v5514_v60  ;;  %v2452_v10 = vrot.slane %v2438_v59, %v5514_v60 }
 0xa43   :  { %v2726_v1 = vpop.permute.xlu0 %2725  ;;  %v2432_v2 = vpop.permute.xlu1 %2431 }
 0xa44   :  { %v2453_v3 = vcombine.low %v2420_v61, %v2432_v2  ;;  %v2454_v29 = vcombine.high %v2420_v61, %v2432_v2 }
 0xa46   :  { %v2461_v42 = vrot.slane %v2453_v3, %v5514_v60  ;;  %v2468_v12 = vrot.slane %v2454_v29, %v5514_v60 }
 0xa47   :  { %v2734_v31 = vpop.permute.xlu0 %2733  ;;  %v2730_v19 = vpop.permute.xlu1 %2729 }
 0xa48   :  { %v2469_v0 = vcombine.low %v2445_v41, %v2461_v42  ;;  %v2470_v37 = vcombine.high %v2445_v41, %v2461_v42  ;;  %v2485_v51 = vcombine.low %v2452_v10, %v2468_v12  ;;  %v2486_v47 = vcombine.high %v2452_v10, %v2468_v12 }
 0xa49   :  { %v2815_v28 = vcombine.low %v2726_v1, %v2734_v31  ;;  %v2816_v33 = vcombine.high %v2726_v1, %v2734_v31 }
 0xa4a   :  { %v2477_v49 = vrot.slane %v2469_v0, %v5525_v4  ;;  %v2484_v20 = vrot.slane %v2470_v37, %v5525_v4  ;;  %v2493_v27 = vrot.slane %v2485_v51, %v5525_v4  ;;  %v2500_v7 = vrot.slane %v2486_v47, %v5525_v4 }
 0xa4b   :  { %v2422_v34 = vpop.permute.xlu0 %2421  ;;  %v2738_v38 = vpop.permute.xlu1 %2737  ;;  %v2823_v53 = vrot.slane %v2815_v28, %v5514_v60  ;;  %v2830_v5 = vrot.slane %v2816_v33, %v5514_v60 }
 0xa4c   :  { %v2573_v52 = vcombine.low %v2477_v49, %v2484_v20  ;;  %v4805_v23 = vcombine.high %v2477_v49, %v2484_v20  ;;  %v2589_v22 = vcombine.low %v2493_v27, %v2500_v7  ;;  %v4806_v48 = vcombine.high %v2493_v27, %v2500_v7 }
 0xa4d   :  { %v2831_v13 = vcombine.low %v2730_v19, %v2738_v38  ;;  %v2832_v46 = vcombine.high %v2730_v19, %v2738_v38 }
 0xa4e   :  { %v2580_v58 = vrot.slane %v2573_v52, %v5514_v60  ;;  %v2588_v43 = vrot.slane %v4805_v23, %v5514_v60  ;;  %v2596_v63 = vrot.slane %v2589_v22, %v5514_v60  ;;  %v2604_v59 = vrot.slane %v4806_v48, %v5514_v60 }
 0xa4f   :  { %v2839_v54 = vrot.slane %v2831_v13, %v5514_v60  ;;  %v2846_v21 = vrot.slane %v2832_v46, %v5514_v60  ;;  %v2434_v55 = vpop.permute.xlu0 %2433  ;;  %v2428_v61 = vpop.permute.xlu1 %2427 }
 0xa50   :  { %v2605_v1 = vcombine.low %v2580_v58, %v2588_v43  ;;  %v2606_v2 = vcombine.high %v2580_v58, %v2588_v43  ;;  %v2521_v10 = vcombine.low %v2422_v34, %v2434_v55  ;;  %v2522_v42 = vcombine.high %v2422_v34, %v2434_v55 }
 0xa51   :  { %v2847_v18 = vcombine.low %v2823_v53, %v2839_v54  ;;  %v2848_v3 = vcombine.high %v2823_v53, %v2839_v54  ;;  %v2863_v29 = vcombine.low %v2830_v5, %v2846_v21  ;;  %v2864_v41 = vcombine.high %v2830_v5, %v2846_v21 }
 0xa52   :  { %v2505_v12 = vcombine.low %v6019_v57, %v2428_v61  ;;  %v2506_v31 = vcombine.high %v6019_v57, %v2428_v61  ;;  %v2529_v47 = vrot.slane %v2521_v10, %v5514_v60  ;;  %v2536_v49 = vrot.slane %v2522_v42, %v5514_v60 }
 0xa53   :  { %v2855_v19 = vrot.slane %v2847_v18, %v5525_v4  ;;  %v2862_v0 = vrot.slane %v2848_v3, %v5525_v4  ;;  %v2871_v37 = vrot.slane %v2863_v29, %v5525_v4  ;;  %v2878_v51 = vrot.slane %v2864_v41, %v5525_v4 }
 0xa54   :  { %v2513_v20 = vrot.slane %v2505_v12, %v5514_v60  ;;  %v2520_v27 = vrot.slane %v2506_v31, %v5514_v60  ;;  %v2621_v7 = vcombine.low %v2596_v63, %v2604_v59  ;;  %v2622_v28 = vcombine.high %v2596_v63, %v2604_v59 }
 0xa55   :  { %v2951_v33 = vcombine.low %v2855_v19, %v2862_v0  ;;  %v4811_v57 = vcombine.high %v2855_v19, %v2862_v0  ;;  %v2967_v13 = vcombine.low %v2871_v37, %v2878_v51  ;;  %v4812_v46 = vcombine.high %v2871_v37, %v2878_v51 }
 0xa56   :  { %v2537_v34 = vcombine.low %v2513_v20, %v2529_v47  ;;  %v2538_v38 = vcombine.high %v2513_v20, %v2529_v47  ;;  %v2553_v52 = vcombine.low %v2520_v27, %v2536_v49  ;;  %v2554_v23 = vcombine.high %v2520_v27, %v2536_v49 }
 0xa57   :  { %v2958_v22 = vrot.slane %v2951_v33, %v5514_v60  ;;  %v2966_v48 = vrot.slane %v4811_v57, %v5514_v60  ;;  %v2613_v54 = vrot.slane %v2605_v1, %v5525_v4  ;;  %v2629_v21 = vrot.slane %v2621_v7, %v5525_v4 }
 0xa58   :  { %v2545_v58 = vrot.slane %v2537_v34, %v5525_v4  ;;  %v2552_v43 = vrot.slane %v2538_v38, %v5525_v4  ;;  %v2561_v53 = vrot.slane %v2553_v52, %v5525_v4  ;;  %v2568_v5 = vrot.slane %v2554_v23, %v5525_v4 }
 0xa59   :  { %v2620_v55 = vrot.slane %v2606_v2, %v5525_v4  ;;  %v2636_v61 = vrot.slane %v2622_v28, %v5525_v4  ;;  %v2974_v29 = vrot.slane %v2967_v13, %v5514_v60  ;;  %v2982_v41 = vrot.slane %v4812_v46, %v5514_v60 }
 0xa5a   :  { %v2641_v63 = vcombine.low %v2545_v58, %v2552_v43  ;;  %v4807_v59 = vcombine.high %v2545_v58, %v2552_v43  ;;  %v2657_v18 = vcombine.low %v2561_v53, %v2568_v5  ;;  %v4808_v3 = vcombine.high %v2561_v53, %v2568_v5 }
 0xa5b   :  { %v2637_v10 = vcombine.low %v2613_v54, %v2629_v21  ;;  %v2638_v42 = vcombine.high %v2613_v54, %v2629_v21  ;;  %v3427_v37 = vsel %vm1068_vm2, %v3325_v44, 0  ;;  %v2639_v51 = vcombine.low %v2620_v55, %v2636_v61 }
 0xa5c   :  { %v2648_v12 = vrot.slane %v2641_v63, %v5514_v60  ;;  %v2656_v1 = vrot.slane %v4807_v59, %v5514_v60  ;;  %v2664_v31 = vrot.slane %v2657_v18, %v5514_v60  ;;  %v2672_v2 = vrot.slane %v4808_v3, %v5514_v60 }
 0xa5d   :  { %v3315_v19 = vpack.c.bf16 %v2637_v10, %v2637_v10  ;;  %v3316_v0 = vpack.c.bf16 %v2638_v42, %v2638_v42  ;;  %v3473_v47 = vsel %vm1068_vm2, %v3326_v45, 0  ;;  %v2983_v49 = vcombine.low %v2958_v22, %v2966_v48 }
 0xa5e   :  { %v2999_v20 = vcombine.low %v2974_v29, %v2982_v41  ;;  %v2984_v27 = vcombine.high %v2958_v22, %v2966_v48  ;;  %v2673_v7 = vcombine.low %v2648_v12, %v2656_v1  ;;  %v2640_v28 = vcombine.high %v2620_v55, %v2636_v61 }
 0xa5f   :  { %5071 = vmatmul.mubr.msk.bf16.vlgmr.msra.gmra.mrb[32].mxu0 %vm1068_vm2, %v3315_v19  ;;  %5077 = vmatmul.mubr.msk.bf16.vlgmr.msra.gmra.mrb[48].mxu1 %vm1068_vm2, %v3316_v0  ;;  %v3000_v33 = vcombine.high %v2974_v29, %v2982_v41  ;;  %v2689_v57 = vcombine.low %v2664_v31, %v2672_v2  ;;  %v2991_v44 = vrot.slane %v2983_v49, %v5525_v4 }
 0xa60   :  { %5081 = vmatpush3.bf16.xpose.msra.mxu0 %v3427_v37  ;;  %5087 = vmatpush3.bf16.xpose.msra.mxu1 %v3473_v47  ;;  %v3007_v32 = vrot.slane %v2999_v20, %v5525_v4  ;;  %v2998_v38 = vrot.slane %v2984_v27, %v5525_v4  ;;  %v3317_v23 = vpack.c.bf16 %v2639_v51, %v2639_v51 }
 0xa61   :  { %5082 = vmatprep.mubr.msk.bf16.mxu0 %vm5368_vm1, %v5367_v15  ;;  %5088 = vmatprep.mubr.msk.bf16.mxu1 %vm5368_vm1, %v5367_v15  ;;  %v3014_v52 = vrot.slane %v3000_v33, %v5525_v4  ;;  %v3318_v22 = vpack.c.bf16 %v2640_v28, %v2640_v28  ;;  %v2681_v46 = vrot.slane %v2673_v7, %v5525_v4 }
 0xa62   :  { %5092 = vmatprep.subr.bf16.mxu0 %v5367_v15  ;;  %5098 = vmatprep.subr.bf16.mxu1 %v5367_v15  ;;  %v3015_v45 = vcombine.low %v2991_v44, %v3007_v32  ;;  %v3016_v34 = vcombine.high %v2991_v44, %v3007_v32  ;;  %v2697_v58 = vrot.slane %v2689_v57, %v5525_v4 }
 0xa63   :  { %v3017_v5 = vcombine.low %v2998_v38, %v3014_v52  ;;  %v3018_v54 = vcombine.high %v2998_v38, %v3014_v52  ;;  %v2674_v21 = vcombine.high %v2648_v12, %v2656_v1  ;;  %v2690_v55 = vcombine.high %v2664_v31, %v2672_v2 }
 0xa64   :  { %v3327_v48 = vpack.c.bf16 %v3015_v45, %v3015_v45  ;;  %v3328_v13 = vpack.c.bf16 %v3016_v34, %v3016_v34  ;;  %v2705_v61 = vcombine.low %v2681_v46, %v2697_v58  ;;  %v2706_v63 = vcombine.high %v2681_v46, %v2697_v58 }
 0xa65   :  { %v3329_v59 = vpack.c.bf16 %v3017_v5, %v3017_v5  ;;  %v3330_v18 = vpack.c.bf16 %v3018_v54, %v3018_v54  ;;  %v2688_v41 = vrot.slane %v2674_v21, %v5525_v4  ;;  %v2704_v10 = vrot.slane %v2690_v55, %v5525_v4 }
 0xa66   :  { %v3519_v43 = vsel %vm1068_vm2, %v3327_v48, 0  ;;  %v3565_v53 = vsel %vm1068_vm2, %v3328_v13, 0  ;;  %v3319_v3 = vpack.c.bf16 %v2705_v61, %v2705_v61  ;;  %v3320_v29 = vpack.c.bf16 %v2706_v63, %v2706_v63 }
 0xa67   :  { %5083 = vmatmul.mubr.msk.bf16.vlgmr.msra.gmra.mrb[36].mxu0 %vm1068_vm2, %v3317_v23  ;;  %5089 = vmatmul.mubr.msk.bf16.vlgmr.msra.gmra.mrb[52].mxu1 %vm1068_vm2, %v3318_v22  ;;  %v3611_v42 = vsel %vm1068_vm2, %v3329_v59, 0  ;;  %v3657_v12 = vsel %vm1068_vm2, %v3330_v18, 0  ;;  %v2707_v1 = vcombine.low %v2688_v41, %v2704_v10  ;;  %v2708_v31 = vcombine.high %v2688_v41, %v2704_v10 }
 0xa68   :  { %5093 = vmatpush3.bf16.xpose.msra.mxu0 %v3519_v43  ;;  %5099 = vmatpush3.bf16.xpose.msra.mxu1 %v3565_v53 }
 0xa69   :  { %5094 = vmatprep.mubr.msk.bf16.mxu0 %vm5368_vm1, %v5367_v15  ;;  %5100 = vmatprep.mubr.msk.bf16.mxu1 %vm5368_vm1, %v5367_v15  ;;  %v3321_v2 = vpack.c.bf16 %v2707_v1, %v2707_v1  ;;  %v3322_v19 = vpack.c.bf16 %v2708_v31, %v2708_v31  ;;  %v3020_v31 = vpop.permute.xlu1 %3019 }
 0xa6a   :  { %5104 = vmatprep.subr.bf16.mxu0 %v5367_v15  ;;  %5110 = vmatprep.subr.bf16.mxu1 %v5367_v15 }
 0xa6f   :  { %5095 = vmatmul.mubr.msk.bf16.vlgmr.msra.gmra.mrb[40].mxu0 %vm1068_vm2, %v3319_v3  ;;  %5101 = vmatmul.mubr.msk.bf16.vlgmr.msra.gmra.mrb[56].mxu1 %vm1068_vm2, %v3320_v29 }
 0xa70   :  { %5105 = vmatpush3.bf16.xpose.msra.mxu0 %v3611_v42  ;;  %5111 = vmatpush3.bf16.xpose.msra.mxu1 %v3657_v12 }
 0xa71   :  { %5106 = vmatprep.mubr.msk.bf16.mxu0 %vm5368_vm1, %v5367_v15  ;;  %5112 = vmatprep.mubr.msk.bf16.mxu1 %vm5368_vm1, %v5367_v15 }
 0xa72   :  { %5116 = vmatprep.subr.bf16.mxu0 %v5367_v15  ;;  %5122 = vmatprep.subr.bf16.mxu1 %v5367_v15 }
 0xa77   :  { %5107 = vmatmul.mubr.msk.bf16.vlgmr.msra.gmra.mrb[44].mxu0 %vm1068_vm2, %v3321_v2  ;;  %5113 = vmatmul.mubr.msk.bf16.vlgmr.msra.gmra.mrb[60].mxu1 %vm1068_vm2, %v3322_v19 }
 0xa78   :  { %5118 = vmatprep.mubr.msk.bf16.mxu0 %vm5368_vm1, %v5367_v15  ;;  %5124 = vmatprep.mubr.msk.bf16.mxu1 %vm5368_vm1, %v5367_v15 }
 0xb32   :  { %v3371_v0 = vpop.f32.mrb[32].mxu0  ;;  %v3417_v37 = vpop.f32.mrb[48].mxu1 }
 0xb33   :  { %v5072_v51 = vpop.f32.mrb[33].mxu0  ;;  %v5078_v47 = vpop.f32.mrb[49].mxu1  ;;  %v3699_v49 = vsel %vm1068_vm2, %v3371_v0, -inf  ;;  %v3702_v20 = vsel %vm1068_vm2, %v3417_v37, -inf }
 0xb34   :  { %3700 = vmax.xlane.f32.xlu1 %v3699_v49  ;;  %v3374_v27 = vpop.f32.mrb[34].mxu0  ;;  %3703 = vmax.xlane.f32.xlu0 %v3702_v20  ;;  %v3420_v7 = vpop.f32.mrb[50].mxu1 }
 0xb35   :  { %v5073_v28 = vpop.f32.mrb[35].mxu0  ;;  %v5079_v33 = vpop.f32.mrb[51].mxu1 }
 0xb3a   :  { %v3463_v57 = vpop.f32.mrb[36].mxu0  ;;  %v3509_v44 = vpop.f32.mrb[52].mxu1 }
 0xb3b   :  { %v5084_v32 = vpop.f32.mrb[37].mxu0  ;;  %v5090_v45 = vpop.f32.mrb[53].mxu1  ;;  %v3705_v34 = vsel %vm1068_vm2, %v3463_v57, -inf  ;;  %v3708_v48 = vsel %vm1068_vm2, %v3509_v44, -inf }
 0xb3c   :  { %v3466_v38 = vpop.f32.mrb[38].mxu0  ;;  %3706 = vmax.xlane.f32.xlu0 %v3705_v34  ;;  %v3512_v52 = vpop.f32.mrb[54].mxu1 }
 0xb3d   :  { %v5085_v23 = vpop.f32.mrb[39].mxu0  ;;  %v5091_v22 = vpop.f32.mrb[55].mxu1 }
 0xb40   :  { %3709 = vmax.xlane.f32.xlu0 %v3708_v48 }
 0xb42   :  { %v3555_v13 = vpop.f32.mrb[40].mxu0  ;;  %v3601_v46 = vpop.f32.mrb[56].mxu1 }
 0xb43   :  { %v5096_v58 = vpop.f32.mrb[41].mxu0  ;;  %v5102_v43 = vpop.f32.mrb[57].mxu1  ;;  %v3711_v53 = vsel %vm1068_vm2, %v3555_v13, -inf  ;;  %v3714_v5 = vsel %vm1068_vm2, %v3601_v46, -inf }
 0xb44   :  { %3712 = vmax.xlane.f32.xlu1 %v3711_v53  ;;  %v3558_v54 = vpop.f32.mrb[42].mxu0  ;;  %3715 = vmax.xlane.f32.xlu0 %v3714_v5  ;;  %v3604_v21 = vpop.f32.mrb[58].mxu1 }
 0xb45   :  { %v5097_v55 = vpop.f32.mrb[43].mxu0  ;;  %v5103_v61 = vpop.f32.mrb[59].mxu1 }
 0xb4a   :  { %v6130_v63 = vpop.f32.mrb[44].mxu0  ;;  %v6132_v59 = vpop.f32.mrb[60].mxu1 }
 0xb4b   :  { %v5108_v18 = vpop.f32.mrb[45].mxu0  ;;  %v5114_v3 = vpop.f32.mrb[61].mxu1  ;;  %v3717_v29 = vsel %vm1068_vm2, %v6130_v63, -inf  ;;  %v3720_v41 = vsel %vm1068_vm2, %v6132_v59, -inf }
 0xb4c   :  { %3718 = vmax.xlane.f32.xlu1 %v3717_v29  ;;  %v3650_v10 = vpop.f32.mrb[46].mxu0  ;;  %3721 = vmax.xlane.f32.xlu0 %v3720_v41  ;;  %v3696_v42 = vpop.f32.mrb[62].mxu1 }
 0xb4d   :  { %v5109_v12 = vpop.f32.mrb[47].mxu0  ;;  %v5115_v1 = vpop.f32.mrb[63].mxu1 }
 0xb5d   :  { %3027 = vrot.lane.b32.xlu1 %v5967_v8, %s5376_s15 }
 0xb61   :  { %3031 = vrot.lane.b32.xlu1 %v5963_v26, %s5376_s15 }
 0xb62   :  { %3023 = vrot.lane.b32.xlu0 %v5959_v11, %s5376_s15 }
 0xb65   :  { %3021 = vrot.lane.b32.xlu1 %v5949_v50, %s5376_s15 }
 0xbc1   :  { %v3701_v2 = vpop.xlane.xlu1 %3700  ;;  %v3704_v19 = vpop.xlane.xlu0 %3703 }
 0xbc2   :  { %v3723_v51 = vsub.f32 %v3371_v0, %v3701_v2  ;;  %v3724_v47 = vsub.f32 %v3417_v37, %v3704_v19 }
 0xbc4   :  { %v3731_v49 = vmul.f32 1.442695, %v3723_v51  ;;  %v3733_v20 = vmul.f32 1.442695, %v3724_v47 }
 0xbc6   :  { %5300 = vpow2.f32 %v3731_v49 }
 0xbc7   :  { %5302 = vpow2.f32 %v3733_v20 }
 0xbc9   :  { %v3707_v27 = vpop.xlane.xlu0 %3706 }
 0xbca   :  { %v3725_v8 = vsub.f32 %v3463_v57, %v3707_v27 }
 0xbcc   :  { %v3735_v7 = vmul.f32 1.442695, %v3725_v8 }
 0xbcd   :  { %v3710_v28 = vpop.xlane.xlu0 %3709 }
 0xbce   :  { %5304 = vpow2.f32 %v3735_v7  ;;  %v3726_v26 = vsub.f32 %v3509_v44, %v3710_v28 }
 0xbd0   :  { %v6146_v33 = vpop.eup %5300  ;;  %v3737_v11 = vmul.f32 1.442695, %v3726_v26 }
 0xbd1   :  { %v6148_v32 = vpop.eup %5302  ;;  %v3713_v45 = vpop.xlane.xlu1 %3712  ;;  %v3747_v0 = vsel %vm1068_vm2, %v6146_v33, 0.0 }
 0xbd2   :  { %v3716_v34 = vpop.xlane.xlu0 %3715  ;;  %5306 = vpow2.f32 %v3737_v11  ;;  %v3727_v37 = vsub.f32 %v3555_v13, %v3713_v45  ;;  %3748 = vadd.xlane.f32.xlu1 %v3747_v0  ;;  %v3750_v57 = vsel %vm1068_vm2, %v6148_v32, 0.0 }
 0xbd3   :  { %v3728_v38 = vsub.f32 %v3601_v46, %v3716_v34  ;;  %3751 = vadd.xlane.f32.xlu0 %v3750_v57 }
 0xbd4   :  { %v3739_v52 = vmul.f32 1.442695, %v3727_v37 }
 0xbd5   :  { %v3741_v44 = vmul.f32 1.442695, %v3728_v38 }
 0xbd6   :  { %5308 = vpow2.f32 %v3739_v52 }
 0xbd7   :  { %5310 = vpow2.f32 %v3741_v44 }
 0xbd8   :  { %v6154_v23 = vpop.eup %5304 }
 0xbd9   :  { %v6156_v22 = vpop.xlane.xlu1 %3718  ;;  %v3753_v48 = vsel %vm1068_vm2, %v6154_v23, 0.0  ;;  %v6160_v58 = vpop.xlane.xlu0 %3721 }
 0xbda   :  { %3754 = vadd.xlane.f32.xlu1 %v3753_v48 }
 0xbdc   :  { %v6162_v13 = vpop.eup %5306 }
 0xbdd   :  { %v3028_v46 = vpop.permute.xlu1 %3027  ;;  %v3756_v43 = vsel %vm1068_vm2, %v6162_v13, 0.0  ;;  %v3024_v21 = vpop.permute.xlu0 %3023 }
 0xbde   :  { %3757 = vadd.xlane.f32.xlu0 %v3756_v43  ;;  %v3043_v5 = vcombine.low %v3020_v31, %v3028_v46  ;;  %v3044_v54 = vcombine.high %v3020_v31, %v3028_v46 }
 0xbe0   :  { %v6166_v53 = vpop.eup %5308  ;;  %v3051_v41 = vrot.slane %v3043_v5, %v5514_v60  ;;  %v3058_v10 = vrot.slane %v3044_v54, %v5514_v60 }
 0xbe1   :  { %v3032_v55 = vpop.permute.xlu1 %3031  ;;  %v3759_v61 = vsel %vm1068_vm2, %v6166_v53, 0.0  ;;  %v6170_v18 = vpop.eup %5310 }
 0xbe2   :  { %v3059_v3 = vcombine.low %v3024_v21, %v3032_v55  ;;  %v3060_v29 = vcombine.high %v3024_v21, %v3032_v55  ;;  %3760 = vadd.xlane.f32.xlu0 %v3759_v61  ;;  %v3762_v1 = vsel %vm1068_vm2, %v6170_v18, 0.0 }
 0xbe4   :  { %v3067_v42 = vrot.slane %v3059_v3, %v5514_v60  ;;  %v3074_v12 = vrot.slane %v3060_v29, %v5514_v60 }
 0xbe6   :  { %v3075_v31 = vcombine.low %v3051_v41, %v3067_v42  ;;  %v3076_v2 = vcombine.high %v3051_v41, %v3067_v42  ;;  %v3091_v19 = vcombine.low %v3058_v10, %v3074_v12  ;;  %v3092_v51 = vcombine.high %v3058_v10, %v3074_v12  ;;  %3763 = vadd.xlane.f32.xlu0 %v3762_v1 }
 0xbe7   :  { %v3730_v10 = vsub.f32 %v6132_v59, %v6160_v58 }
 0xbe8   :  { %v3083_v47 = vrot.slane %v3075_v31, %v5525_v4  ;;  %v3090_v49 = vrot.slane %v3076_v2, %v5525_v4  ;;  %v3099_v20 = vrot.slane %v3091_v19, %v5525_v4  ;;  %v3106_v27 = vrot.slane %v3092_v51, %v5525_v4 }
 0xbe9   :  { %v3745_v42 = vmul.f32 1.442695, %v3730_v10 }
 0xbea   :  { %v3179_v8 = vcombine.low %v3083_v47, %v3090_v49  ;;  %v4813_v7 = vcombine.high %v3083_v47, %v3090_v49  ;;  %v3195_v28 = vcombine.low %v3099_v20, %v3106_v27  ;;  %v4814_v26 = vcombine.high %v3099_v20, %v3106_v27 }
 0xbeb   :  { %3029 = vrot.lane.b32.xlu1 %v5982_v17, %s5376_s15 }
 0xbec   :  { %v3186_v11 = vrot.slane %v3179_v8, %v5514_v60  ;;  %v3194_v45 = vrot.slane %v4813_v7, %v5514_v60  ;;  %v3202_v34 = vrot.slane %v3195_v28, %v5514_v60  ;;  %v3210_v0 = vrot.slane %v4814_v26, %v5514_v60 }
 0xbee   :  { %v3211_v37 = vcombine.low %v3186_v11, %v3194_v45  ;;  %v3227_v38 = vcombine.low %v3202_v34, %v3210_v0  ;;  %v3212_v57 = vcombine.high %v3186_v11, %v3194_v45  ;;  %v3228_v52 = vcombine.high %v3202_v34, %v3210_v0 }
 0xbef   :  { %3033 = vrot.lane.b32.xlu1 %v5980_v6, %s5376_s15  ;;  %v3729_v6 = vsub.f32 %v6130_v63, %v6156_v22  ;;  %v3022_v63 = vpop.permute.xlu1 %3021 }
 0xbf0   :  { %v3219_v44 = vrot.slane %v3211_v37, %v5525_v4  ;;  %v3235_v48 = vrot.slane %v3227_v38, %v5525_v4  ;;  %v3226_v17 = vrot.slane %v3212_v57, %v5525_v4  ;;  %v3242_v46 = vrot.slane %v3228_v52, %v5525_v4 }
 0xbf1   :  { %v3743_v41 = vmul.f32 1.442695, %v3729_v6 }
 0xbf2   :  { %v3243_v43 = vcombine.low %v3219_v44, %v3235_v48  ;;  %v3244_v5 = vcombine.high %v3219_v44, %v3235_v48  ;;  %v3245_v54 = vcombine.low %v3226_v17, %v3242_v46  ;;  %v3246_v21 = vcombine.high %v3226_v17, %v3242_v46 }
 0xbf3   :  { %5312 = vpow2.f32 %v3743_v41 }
 0xbf4   :  { %v3795_v55 = vpack.c.bf16 %v3243_v43, %v3243_v43  ;;  %v3796_v61 = vpack.c.bf16 %v3244_v5, %v3244_v5  ;;  %5314 = vpow2.f32 %v3745_v42  ;;  %v3797_v49 = vpack.c.bf16 %v3245_v54, %v3245_v54 }
 0xbf5   :  { %v3798_v27 = vpack.c.bf16 %v3246_v21, %v3246_v21 }
 0xbf6   :  { %v3807_v3 = vsel %vm1544_vm4, %v3795_v55, 0  ;;  %v3853_v29 = vsel %vm1544_vm4, %v3796_v61, 0 }
 0xbf7   :  { %5117 = vmatpush3.bf16.msra.mxu0 %v3807_v3  ;;  %5123 = vmatpush3.bf16.msra.mxu1 %v3853_v29  ;;  %v3945_v26 = vsel %vm1544_vm4, %v3798_v27, 0 }
 0xbf8   :  { %5128 = vmatprep.subr.bf16.mxu0 %v5367_v15  ;;  %5134 = vmatprep.subr.bf16.mxu1 %v5367_v15 }
 0xbfc   :  { %3025 = vrot.lane.b32.xlu0 %v5978_v36, %s5376_s15 }
 0xbfd   :  { %v6204_v12 = vpop.eup %5312 }
 0xbfe   :  { %v3765_v1 = vsel %vm1068_vm2, %v6204_v12, 0.0  ;;  %v6208_v31 = vpop.eup %5314 }
 0xbff   :  { %v3768_v36 = vsel %vm1068_vm2, %v6208_v31, 0.0 }
 0xc13   :  { %3766 = vadd.xlane.f32.xlu1 %v3765_v1 }
 0xc1b   :  { %3769 = vadd.xlane.f32.xlu0 %v3768_v36 }
 0xc31   :  { %4474 = vrot.lane.b32.xlu0 %v5888_v9, %s5377_s18  ;;  %v3899_v9 = vsel %vm1544_vm4, %v3797_v49, 0 }
 0xc5f   :  { %v3749_v22 = vpop.xlane.xlu1 %3748 }
 0xc60   :  { %5316 = vrcp.f32 %v3749_v22  ;;  %v3752_v59 = vpop.xlane.xlu0 %3751 }
 0xc61   :  { %5318 = vrcp.f32 %v3752_v59 }
 0xc67   :  { %v3755_v58 = vpop.xlane.xlu1 %3754 }
 0xc68   :  { %5320 = vrcp.f32 %v3755_v58 }
 0xc6a   :  { %v5317_v2 = vpop.eup %5316 }
 0xc6b   :  { %v5319_v19 = vpop.eup %5318  ;;  %v3779_v51 = vmul.f32 %v5317_v2, %v6146_v33  ;;  %v3758_v47 = vpop.xlane.xlu0 %3757 }
 0xc6c   :  { %v3780_v20 = vmul.f32 %v5319_v19, %v6148_v32  ;;  %5322 = vrcp.f32 %v3758_v47  ;;  %v3030_v11 = vpop.permute.xlu1 %3029 }
 0xc6d   :  { %v3787_v8 = vpack.c.bf16 %v3779_v51, %v3779_v51  ;;  %v3111_v37 = vcombine.low %v3022_v63, %v3030_v11  ;;  %v3112_v38 = vcombine.high %v3022_v63, %v3030_v11 }
 0xc6e   :  { %v3788_v7 = vpack.c.bf16 %v3780_v20, %v3780_v20 }
 0xc6f   :  { %5119 = vmatmul.mubr.msk.bf16.vlgmr.msra.gmra.mrb[48].mxu0 %vm1068_vm2, %v3787_v8  ;;  %v3761_v28 = vpop.xlane.xlu0 %3760  ;;  %v3126_v43 = vrot.slane %v3112_v38, %v5514_v60 }
 0xc70   :  { %5125 = vmatmul.mubr.msk.bf16.vlgmr.msra.gmra.mrb[64].mxu1 %vm1068_vm2, %v3788_v7  ;;  %5129 = vmatpush3.bf16.msra.mxu0 %v3899_v9  ;;  %v3034_v52 = vpop.permute.xlu1 %3033  ;;  %5324 = vrcp.f32 %v3761_v28 }
 0xc71   :  { %5135 = vmatpush3.bf16.msra.mxu1 %v3945_v26  ;;  %5130 = vmatprep.mubr.msk.bf16.mxu0 %vm5368_vm1, %v5367_v15 }
 0xc72   :  { %v5321_v33 = vpop.eup %5320  ;;  %5136 = vmatprep.mubr.msk.bf16.mxu1 %vm5368_vm1, %v5367_v15  ;;  %5140 = vmatprep.subr.bf16.mxu0 %v5367_v15 }
 0xc73   :  { %v3781_v32 = vmul.f32 %v5321_v33, %v6154_v23  ;;  %v3764_v45 = vpop.xlane.xlu0 %3763  ;;  %5146 = vmatprep.subr.bf16.mxu1 %v5367_v15  ;;  %v3119_v23 = vrot.slane %v3111_v37, %v5514_v60 }
 0xc74   :  { %5326 = vrcp.f32 %v3764_v45 }
 0xc75   :  { %v3789_v34 = vpack.c.bf16 %v3781_v32, %v3781_v32 }
 0xc76   :  { %v5323_v0 = vpop.eup %5322 }
 0xc77   :  { %v3782_v57 = vmul.f32 %v5323_v0, %v6162_v13  ;;  %5131 = vmatmul.mubr.msk.bf16.vlgmr.msra.gmra.mrb[52].mxu0 %vm1068_vm2, %v3789_v34  ;;  %v3026_v44 = vpop.permute.xlu0 %3025 }
 0xc78   :  { %v3127_v48 = vcombine.low %v3026_v44, %v3034_v52  ;;  %v3128_v17 = vcombine.high %v3026_v44, %v3034_v52  ;;  %5142 = vmatprep.mubr.msk.bf16.mxu0 %vm5368_vm1, %v5367_v15 }
 0xc79   :  { %v3790_v46 = vpack.c.bf16 %v3782_v57, %v3782_v57 }
 0xc7a   :  { %v3135_v5 = vrot.slane %v3127_v48, %v5514_v60  ;;  %v3142_v54 = vrot.slane %v3128_v17, %v5514_v60  ;;  %v5325_v49 = vpop.eup %5324 }
 0xc7b   :  { %5137 = vmatmul.mubr.msk.bf16.vlgmr.msra.gmra.mrb[68].mxu1 %vm1068_vm2, %v3790_v46  ;;  %v3783_v32 = vmul.f32 %v5325_v49, %v6166_v53 }
 0xc7c   :  { %v3143_v13 = vcombine.low %v3119_v23, %v3135_v5  ;;  %v3144_v21 = vcombine.high %v3119_v23, %v3135_v5  ;;  %v3159_v55 = vcombine.low %v3126_v43, %v3142_v54  ;;  %v3160_v61 = vcombine.high %v3126_v43, %v3142_v54  ;;  %5148 = vmatprep.mubr.msk.bf16.mxu1 %vm5368_vm1, %v5367_v15 }
 0xc7d   :  { %v3791_v44 = vpack.c.bf16 %v3783_v32, %v3783_v32 }
 0xc7e   :  { %v3151_v3 = vrot.slane %v3143_v13, %v5525_v4  ;;  %v3158_v29 = vrot.slane %v3144_v21, %v5525_v4  ;;  %v3167_v6 = vrot.slane %v3159_v55, %v5525_v4  ;;  %v3174_v41 = vrot.slane %v3160_v61, %v5525_v4  ;;  %v5327_v9 = vpop.eup %5326 }
 0xc7f   :  { %v3784_v45 = vmul.f32 %v5327_v9, %v6170_v18 }
 0xc80   :  { %v3247_v10 = vcombine.low %v3151_v3, %v3158_v29  ;;  %v4815_v42 = vcombine.high %v3151_v3, %v3158_v29  ;;  %v3263_v1 = vcombine.low %v3167_v6, %v3174_v41  ;;  %v4816_v36 = vcombine.high %v3167_v6, %v3174_v41 }
 0xc81   :  { %v3792_v48 = vpack.c.bf16 %v3784_v45, %v3784_v45 }
 0xc82   :  { %v3254_v63 = vrot.slane %v3247_v10, %v5514_v60  ;;  %v3262_v22 = vrot.slane %v4815_v42, %v5514_v60  ;;  %v3270_v59 = vrot.slane %v3263_v1, %v5514_v60  ;;  %v3278_v58 = vrot.slane %v4816_v36, %v5514_v60 }
 0xc84   :  { %v3279_v2 = vcombine.low %v3254_v63, %v3262_v22  ;;  %v3295_v19 = vcombine.low %v3270_v59, %v3278_v58  ;;  %v3280_v51 = vcombine.high %v3254_v63, %v3262_v22  ;;  %v3296_v47 = vcombine.high %v3270_v59, %v3278_v58 }
 0xc86   :  { %v3287_v20 = vrot.slane %v3279_v2, %v5525_v4  ;;  %v3303_v27 = vrot.slane %v3295_v19, %v5525_v4  ;;  %v3294_v8 = vrot.slane %v3280_v51, %v5525_v4  ;;  %v3310_v7 = vrot.slane %v3296_v47, %v5525_v4 }
 0xc88   :  { %v3311_v28 = vcombine.low %v3287_v20, %v3303_v27  ;;  %v3312_v26 = vcombine.high %v3287_v20, %v3303_v27  ;;  %v3313_v11 = vcombine.low %v3294_v8, %v3310_v7  ;;  %v3314_v33 = vcombine.high %v3294_v8, %v3310_v7 }
 0xc8a   :  { %v3799_v34 = vpack.c.bf16 %v3311_v28, %v3311_v28  ;;  %v3800_v0 = vpack.c.bf16 %v3312_v26, %v3312_v26  ;;  %v3801_v57 = vpack.c.bf16 %v3313_v11, %v3313_v11  ;;  %v3802_v52 = vpack.c.bf16 %v3314_v33, %v3314_v33 }
 0xc8c   :  { %v3991_v37 = vsel %vm1544_vm4, %v3799_v34, 0  ;;  %v4037_v38 = vsel %vm1544_vm4, %v3800_v0, 0  ;;  %v4083_v53 = vsel %vm1544_vm4, %v3801_v57, 0  ;;  %v4129_v18 = vsel %vm1544_vm4, %v3802_v52, 0 }
 0xc8d   :  { %5141 = vmatpush3.bf16.msra.mxu0 %v3991_v37  ;;  %5147 = vmatpush3.bf16.msra.mxu1 %v4037_v38 }
 0xc8e   :  { %5152 = vmatprep.subr.bf16.mxu0 %v5367_v15  ;;  %5158 = vmatprep.subr.bf16.mxu1 %v5367_v15 }
 0xc90   :  { %5143 = vmatmul.mubr.msk.bf16.vlgmr.msra.gmra.mrb[56].mxu0 %vm1068_vm2, %v3791_v44  ;;  %5149 = vmatmul.mubr.msk.bf16.vlgmr.msra.gmra.mrb[72].mxu1 %vm1068_vm2, %v3792_v48 }
 0xc91   :  { %5153 = vmatpush3.bf16.msra.mxu0 %v4083_v53  ;;  %5159 = vmatpush3.bf16.msra.mxu1 %v4129_v18 }
 0xc92   :  { %5154 = vmatprep.mubr.msk.bf16.mxu0 %vm5368_vm1, %v5367_v15  ;;  %5160 = vmatprep.mubr.msk.bf16.mxu1 %vm5368_vm1, %v5367_v15 }
 0xc93   :  { %5164 = vmatprep.subr.bf16.mxu0 %v5367_v15  ;;  %5172 = vmatprep.subr.bf16.mxu1 %v5367_v15 }
 0xca0   :  { %v3767_v17 = vpop.xlane.xlu1 %3766 }
 0xca1   :  { %5328 = vrcp.f32 %v3767_v17 }
 0xca8   :  { %v3770_v46 = vpop.xlane.xlu0 %3769 }
 0xca9   :  { %5330 = vrcp.f32 %v3770_v46 }
 0xcab   :  { %v5329_v23 = vpop.eup %5328 }
 0xcac   :  { %v3785_v43 = vmul.f32 %v5329_v23, %v6204_v12  ;;  %v4475_v55 = vpop.permute.xlu0 %4474 }
 0xcae   :  { %v3793_v5 = vpack.c.bf16 %v3785_v43, %v3785_v43 }
 0xcb0   :  { %5155 = vmatmul.mubr.msk.bf16.vlgmr.msra.gmra.mrb[60].mxu0 %vm1068_vm2, %v3793_v5 }
 0xcb1   :  { %5168 = vmatprep.mubr.msk.bf16.mxu0 %vm5368_vm1, %v5367_v15  ;;  %5165 = vmatpush3.bf16.msra.mxu0 %v4475_v55 }
 0xcb2   :  { %5166 = vmatprep.subr.bf16.mxu0 %v5367_v15 }
 0xcb3   :  { %v5331_v54 = vpop.eup %5330 }
 0xcb4   :  { %v3786_v13 = vmul.f32 %v5331_v54, %v6208_v31 }
 0xcb6   :  { %v3794_v21 = vpack.c.bf16 %v3786_v13, %v3786_v13 }
 0xcb8   :  { %5161 = vmatmul.mubr.msk.bf16.vlgmr.msra.gmra.mrb[76].mxu1 %vm1068_vm2, %v3794_v21 }
 0xcb9   :  { %5176 = vmatprep.mubr.msk.bf16.mxu1 %vm5368_vm1, %v5367_v15 }
 0xd42   :  { %v3843_v12 = vpop.f32.mrb[48].mxu0 }
 0xd43   :  { %v3889_v61 = vpop.f32.mrb[64].mxu1  ;;  %v5120_v3 = vpop.f32.mrb[49].mxu0 }
 0xd44   :  { %v5126_v29 = vpop.f32.mrb[65].mxu1  ;;  %v3846_v6 = vpop.f32.mrb[50].mxu0 }
 0xd45   :  { %v3892_v41 = vpop.f32.mrb[66].mxu1  ;;  %v5121_v10 = vpop.f32.mrb[51].mxu0 }
 0xd46   :  { %v5127_v42 = vpop.f32.mrb[67].mxu1 }
 0xd4a   :  { %v3935_v1 = vpop.f32.mrb[52].mxu0 }
 0xd4b   :  { %v4171_v31 = vcombine.low %v3843_v12, %v3935_v1  ;;  %v4172_v36 = vcombine.high %v3843_v12, %v3935_v1  ;;  %v5132_v63 = vpop.f32.mrb[53].mxu0 }
 0xd4c   :  { %v3938_v22 = vpop.f32.mrb[54].mxu0 }
 0xd4d   :  { %v5133_v59 = vpop.f32.mrb[55].mxu0  ;;  %v4179_v49 = vrot.slane %v4171_v31, %v5514_v60  ;;  %v4186_v20 = vrot.slane %v4172_v36, %v5514_v60 }
 0xd4e   :  { %v3981_v58 = vpop.f32.mrb[68].mxu1 }
 0xd4f   :  { %v4187_v2 = vcombine.low %v3889_v61, %v3981_v58  ;;  %v4188_v19 = vcombine.high %v3889_v61, %v3981_v58  ;;  %v5138_v51 = vpop.f32.mrb[69].mxu1 }
 0xd50   :  { %v3984_v47 = vpop.f32.mrb[70].mxu1 }
 0xd51   :  { %v4195_v27 = vrot.slane %v4187_v2, %v5514_v60  ;;  %v4202_v8 = vrot.slane %v4188_v19, %v5514_v60  ;;  %v5139_v7 = vpop.f32.mrb[71].mxu1 }
 0xd53   :  { %v4203_v9 = vcombine.low %v4179_v49, %v4195_v27  ;;  %v4204_v28 = vcombine.high %v4179_v49, %v4195_v27  ;;  %v4219_v26 = vcombine.low %v4186_v20, %v4202_v8  ;;  %v4220_v11 = vcombine.high %v4186_v20, %v4202_v8 }
 0xd55   :  { %v4211_v33 = vrot.slane %v4203_v9, %v5525_v4  ;;  %v4218_v32 = vrot.slane %v4204_v28, %v5525_v4  ;;  %v4227_v45 = vrot.slane %v4219_v26, %v5525_v4  ;;  %v4234_v34 = vrot.slane %v4220_v11, %v5525_v4 }
 0xd57   :  { %v4307_v0 = vcombine.low %v4211_v33, %v4218_v32  ;;  %v4833_v37 = vcombine.high %v4211_v33, %v4218_v32  ;;  %v4323_v38 = vcombine.low %v4227_v45, %v4234_v34  ;;  %v4834_v57 = vcombine.high %v4227_v45, %v4234_v34 }
 0xd59   :  { %v4314_v52 = vrot.slane %v4307_v0, %v5514_v60  ;;  %v4322_v44 = vrot.slane %v4833_v37, %v5514_v60  ;;  %v4330_v48 = vrot.slane %v4323_v38, %v5514_v60  ;;  %v4338_v53 = vrot.slane %v4834_v57, %v5514_v60 }
 0xd5b   :  { %v4340_v18 = vcombine.high %v4314_v52, %v4322_v44  ;;  %v4356_v17 = vcombine.high %v4330_v48, %v4338_v53  ;;  %v4339_v46 = vcombine.low %v4314_v52, %v4322_v44  ;;  %v4355_v23 = vcombine.low %v4330_v48, %v4338_v53 }
 0xd5d   :  { %v6288_v43 = vrot.slane %v4340_v18, %v5525_v4  ;;  %v4370_v5 = vrot.slane %v4356_v17, %v5525_v4  ;;  %v6292_v54 = vrot.slane %v4339_v46, %v5525_v4  ;;  %v6295_v13 = vrot.slane %v4355_v23, %v5525_v4 }
 0xd5f   :  { %v4374_v21 = vcombine.high %v6288_v43, %v4370_v5  ;;  %v4371_v55 = vcombine.low %v6292_v54, %v6295_v13  ;;  %v4372_v12 = vcombine.high %v6292_v54, %v6295_v13  ;;  %v4373_v61 = vcombine.low %v6288_v43, %v4370_v5  ;;  %v5342_v13 = vld [vmem:[%s6445_s5] sm:$0xff] }
 0xd60   :  { %v4528_v54 = vsub.s32 7, %v5448_v24 }
 0xd63   :  { %v4027_v3 = vpop.f32.mrb[56].mxu0  ;;  %v4073_v29 = vpop.f32.mrb[72].mxu1 }
 0xd64   :  { %v5144_v6 = vpop.f32.mrb[57].mxu0  ;;  %v5150_v41 = vpop.f32.mrb[73].mxu1 }
 0xd65   :  { %v4030_v10 = vpop.f32.mrb[58].mxu0  ;;  %v4076_v42 = vpop.f32.mrb[74].mxu1 }
 0xd66   :  { %v5145_v1 = vpop.f32.mrb[59].mxu0  ;;  %v5151_v31 = vpop.f32.mrb[75].mxu1 }
 0xd83   :  { %v4119_v36 = vpop.f32.mrb[60].mxu0 }
 0xd84   :  { %v4239_v63 = vcombine.low %v4027_v3, %v4119_v36  ;;  %v4240_v22 = vcombine.high %v4027_v3, %v4119_v36  ;;  %v5156_v59 = vpop.f32.mrb[61].mxu0 }
 0xd85   :  { %v4122_v58 = vpop.f32.mrb[62].mxu0 }
 0xd86   :  { %v5157_v2 = vpop.f32.mrb[63].mxu0  ;;  %v4247_v27 = vrot.slane %v4239_v63, %v5514_v60  ;;  %v4254_v8 = vrot.slane %v4240_v22, %v5514_v60 }
 0xd8b   :  { %v4165_v19 = vpop.f32.mrb[76].mxu1 }
 0xd8c   :  { %v4255_v51 = vcombine.low %v4073_v29, %v4165_v19  ;;  %v4256_v47 = vcombine.high %v4073_v29, %v4165_v19  ;;  %v5162_v49 = vpop.f32.mrb[77].mxu1 }
 0xd8d   :  { %v4168_v20 = vpop.f32.mrb[78].mxu1 }
 0xd8e   :  { %v4263_v7 = vrot.slane %v4255_v51, %v5514_v60  ;;  %v4270_v9 = vrot.slane %v4256_v47, %v5514_v60  ;;  %v5163_v28 = vpop.f32.mrb[79].mxu1 }
 0xd90   :  { %v4271_v26 = vcombine.low %v4247_v27, %v4263_v7  ;;  %v4272_v11 = vcombine.high %v4247_v27, %v4263_v7  ;;  %v4287_v33 = vcombine.low %v4254_v8, %v4270_v9  ;;  %v4288_v32 = vcombine.high %v4254_v8, %v4270_v9 }
 0xd92   :  { %v4279_v45 = vrot.slane %v4271_v26, %v5525_v4  ;;  %v4286_v34 = vrot.slane %v4272_v11, %v5525_v4  ;;  %v4295_v0 = vrot.slane %v4287_v33, %v5525_v4  ;;  %v4302_v37 = vrot.slane %v4288_v32, %v5525_v4 }
 0xd94   :  { %v4375_v38 = vcombine.low %v4279_v45, %v4286_v34  ;;  %v4835_v57 = vcombine.high %v4279_v45, %v4286_v34  ;;  %v4391_v52 = vcombine.low %v4295_v0, %v4302_v37  ;;  %v4836_v44 = vcombine.high %v4295_v0, %v4302_v37 }
 0xd96   :  { %v4382_v48 = vrot.slane %v4375_v38, %v5514_v60  ;;  %v4390_v53 = vrot.slane %v4835_v57, %v5514_v60  ;;  %v4398_v18 = vrot.slane %v4391_v52, %v5514_v60  ;;  %v4406_v17 = vrot.slane %v4836_v44, %v5514_v60  ;;  %v5341_v60 = vld [vmem:[%s6442_s2 + $0x8] sm:$0xff]  }
 0xd98   :  { %v4408_v46 = vcombine.high %v4382_v48, %v4390_v53  ;;  %v4424_v23 = vcombine.high %v4398_v18, %v4406_v17  ;;  %v4407_v43 = vcombine.low %v4382_v48, %v4390_v53  ;;  %v4423_v5 = vcombine.low %v4398_v18, %v4406_v17 }
 0xd9a   :  { %v4422_v3 = vrot.slane %v4408_v46, %v5525_v4  ;;  %v4438_v29 = vrot.slane %v4424_v23, %v5525_v4  ;;  %v4415_v6 = vrot.slane %v4407_v43, %v5525_v4  ;;  %v4431_v41 = vrot.slane %v4423_v5, %v5525_v4 }
 0xd9c   :  { %v4442_v10 = vcombine.high %v4422_v3, %v4438_v29  ;;  %v4440_v42 = vcombine.high %v4415_v6, %v4431_v41  ;;  %v4439_v1 = vcombine.low %v4415_v6, %v4431_v41  ;;  %v4441_v31 = vcombine.low %v4422_v3, %v4438_v29  ;;  %v5251_v3 = vld [vmem:[%s6443_s3 + $0x8] sm:$0xff]   ;;  %v5252_v29 = vld [vmem:[%s6444_s4] sm:$0xff]   ;;  %v5254_v6 = vld [vmem:[%s6444_s4 + $0x10] sm:$0xff]  }
 0xd9d   :  { %v5255_v41 = vld [vmem:[%s6444_s4 + $0x18] sm:$0xff]  }
 0xd9e   :  { %v5241_v36 = vpack.i.bf16 %v4442_v10, %v4374_v21  ;;  %v5231_v63 = vpack.i.bf16 %v4440_v42, %v4372_v12  ;;  %v5236_v22 = vpack.i.bf16 %v4441_v31, %v4373_v61  ;;  %v5256_v10 = vld [vmem:[%s6444_s4 + $0x20] sm:$0xff]   ;;  %v5257_v42 = vld [vmem:[%s6444_s4 + $0x28] sm:$0xff]  }
 0xda0   :  { %5242 = vrot.lane.b32.xlu0 %v5241_v36, %s5380_s21  ;;  %5232 = vrot.lane.b32.xlu1 %v5231_v63, %s5379_s20 }
 0xda4   :  { %5237 = vrot.lane.b32.xlu1 %v5236_v22, %s5378_s19 }
 0xda8   :  { %4476 = vrot.lane.b32.xlu1 %v5341_v60, %s5377_s18 }
 0xe12   :  { %v5233_v4 = vpop.permute.xlu1 %5232  ;;  %v5243_v2 = vpop.permute.xlu0 %5242 }
 0xe13   :  { %v5235_v59 = vunpack.i.h.bf16 %v5233_v4  ;;  %v5234_v58 = vunpack.i.l.bf16 %v5233_v4  ;;  %v5245_v61 = vunpack.i.h.bf16 %v5243_v2  ;;  %v5244_v51 = vunpack.i.l.bf16 %v5243_v2  ;;  %v60_v2 = vld [vmem:[%s6445_s5 + $0x8] sm:$0xf] }
 0xe15   :  { %v4467_v47 = vsel %vm1068_vm2, %v4371_v55, %v5234_v58  ;;  %v4468_v49 = vsel %vm1068_vm2, %v4439_v1, %v5235_v59  ;;  %v4529_v55 = vrot.slane %v5342_v13, %v4528_v54 }
 0xe16   :  { %v5238_v19 = vpop.permute.xlu1 %5237 }
 0xe17   :  { %v5240_v21 = vunpack.i.h.bf16 %v5238_v19  ;;  %v5239_v12 = vunpack.i.l.bf16 %v5238_v19 }
 0xe19   :  { %v4469_v20 = vsel %vm2208_vm5, %v4467_v47, %v5239_v12  ;;  %v4470_v27 = vsel %vm2208_vm5, %v4468_v49, %v5240_v21  ;;  %v4561_v21 = vrot.slane %v60_v2, %v97_v25  ;;  %v5259_v25 = vld [vmem:[%s6444_s4 + $0x38] sm:$0xff]  }
 0xe1a   :  { %v4471_v8 = vsel %vm2211_vm6, %v4469_v20, %v5244_v51  ;;  %v4472_v7 = vsel %vm2211_vm6, %v4470_v27, %v5245_v61  ;;  %v4477_v9 = vpop.permute.xlu1 %4476  ;;  %v4567_v51 = vrot.slane %v60_v2, %v103_v30  ;;  %v4574_v30 = vrot.slane %v60_v2, %v110_v39 }
 0xe1b   :  { %v4473_v28 = vpack.c.bf16 %v4472_v7, %v4471_v8  ;;  %5167 = vmatpush3.bf16.msra.mxu0 %v4477_v9  ;;  %v5258_v7 = vld [vmem:[%s6444_s4 + $0x30] sm:$0xff]  }
 0xe1c   :  { %5180 = vmatprep.subr.bf16.mxu0 %v5367_v15 }
 0xe1e   :  { %5169 = vmatmul.mubr.msk.bf16.vlgmr.msra.gmra.mrb[64].mxu0 %vm67_vm0, %v4473_v28 }
 0xe1f   :  { %5196 = vmatprep.mubr.msk.bf16.mxu0 %vm5368_vm1, %v5367_v15  ;;  %5181 = vmatpush3.bf16.msra.mxu0 %v5252_v29 }
 0xe20   :  { %5182 = vmatprep.subr.bf16.mxu0 %v5367_v15 }
 0xef1   :  { %v4517_v26 = vpop.f32.mrb[64].mxu0 }
 0xef2   :  { %v4524_v11 = vadd.f32 %v4517_v26, %v5920_v35  ;;  %v5170_v33 = vpop.f32.mrb[65].mxu0 }
 0xef3   :  { %v4520_v32 = vpop.f32.mrb[66].mxu0 }
 0xef4   :  { %v6344_v45 = vadd.f32 %v4529_v55, %v4524_v11  ;;  %v4525_v34 = vadd.f32 %v4520_v32, %v5925_v56  ;;  %v5171_v0 = vpop.f32.mrb[67].mxu0 }
 0xef6   :  { %v6347_v37 = vadd.f32 %v4529_v55, %v4525_v34  ;;  %v4532_v38 = vsel %vm67_vm0, %v6344_v45, 0.0 }
 0xef7   :  { %4533 = vadd.xlane.f32.xlu0 %v4532_v38 }
 0xef8   :  { %v4535_v57 = vsel %vm67_vm0, %v6347_v37, 0.0 }
 0xef9   :  { %4536 = vadd.xlane.f32.xlu1 %v4535_v57 }
 0xf0a   :  { %4733 = vrot.lane.b32.xlu1 %v5949_v50, %s5377_s18 }
 0xf84   :  { %v4534_v35 = vpop.xlane.xlu0 %4533 }
 0xf85   :  { %v4538_v52 = vmul.f32 0.03125, %v4534_v35 }
 0xf86   :  { %v4537_v44 = vpop.xlane.xlu1 %4536 }
 0xf87   :  { %v4540_v48 = vsub.f32 %v6344_v45, %v4538_v52  ;;  %v4539_v56 = vmul.f32 0.03125, %v4537_v44 }
 0xf89   :  { %v4541_v53 = vsub.f32 %v6347_v37, %v4539_v56  ;;  %v4542_v18 = vmul.f32 %v4540_v48, %v4540_v48 }
 0xf8a   :  { %v4734_v17 = vpop.permute.xlu1 %4733 }
 0xf8b   :  { %v4739_v46 = vsel %vm4737_vm7, %v5551_v40, %v4734_v17  ;;  %v4544_v23 = vsel %vm67_vm0, %v4542_v18, 0.0  ;;  %v4543_v43 = vmul.f32 %v4541_v53, %v4541_v53  ;;  %v5250_v40 = vld [vmem:[%s6443_s3] sm:$0xff]  }
 0xf8c   :  { %v4742_v50 = vsel %vm4740_vm8, %v4739_v46, %v4734_v17  ;;  %4545 = vadd.xlane.f32.xlu0 %v4544_v23  ;;  %5173 = vmatpush3.bf16.msra.mxu1 %v5250_v40 }
 0xf8d   :  { %4744 = vst [vmem:[%s6447_s7 + $0x8] sm:$0xff] %v4742_v50  ;;  %v4547_v5 = vsel %vm67_vm0, %v4543_v43, 0.0  ;;  %5174 = vmatprep.subr.bf16.mxu1 %v5367_v15 }
 0xf90   :  { %4548 = vadd.xlane.f32.xlu0 %v4547_v5  ;;  %5175 = vmatpush3.bf16.msra.mxu1 %v5251_v3 }
 0xfa6   :  { %4731 = vrot.lane.b32.xlu0 %v5936_v62, %s5377_s18  ;;  %v5253_v62 = vld [vmem:[%s6444_s4 + $0x8] sm:$0xff]   ;;  %s5381_s4 = smov [#allocation2]  }
 0xfa7   :  { %5183 = vmatpush3.bf16.msra.mxu0 %v5253_v62  ;;  %s4750_s2 = sshll.u32 %s5381_s4, 4  ;;  %s4751_s2 = int_to_ptr.vmem [resolvable:$true] %s4750_s2 }
 0xfa8   :  { %5184 = vmatprep.subr.bf16.mxu0 %v5367_v15  ;;  %s5343_s12 = scalar_lea.vmem %s4751_s2, 256  ;;  %p5348_p1 = scmp.lt.s32.totalorder %s4751_s2, %s4751_s2 }
 0xfa9   :  { %p5344_p0 = scmp.ne.s32.totalorder %s4751_s2, %s5343_s12  ;;  %p5349_p2 = scmp.lt.s32.totalorder %s5343_s12, %s5343_s12 }
 0xfab   :  { %5185 = vmatpush3.bf16.msra.mxu0 %v5254_v6  ;;  %p5350_p3 = por %p5349_p2, %p5348_p1 }
 0xfac   :  { %5186 = vmatprep.subr.bf16.mxu0 %v5367_v15 }
 0xfad   :  { %p5351_p4 = pnand %p5350_p3, %p5344_p0 }
 0xfaf   :  { %5187 = vmatpush3.bf16.msra.mxu0 %v5255_v41 }
 0xfb0   :  { %5188 = vmatprep.subr.bf16.mxu0 %v5367_v15 }
 0xfb3   :  { %5189 = vmatpush3.bf16.msra.mxu0 %v5256_v10 }
 0xfb4   :  { %5190 = vmatprep.subr.bf16.mxu0 %v5367_v15 }
 0xfb7   :  { %5191 = vmatpush3.bf16.msra.mxu0 %v5257_v42 }
 0xfb8   :  { %5192 = vmatprep.subr.bf16.mxu0 %v5367_v15 }
 0xfbb   :  { %5193 = vmatpush3.bf16.msra.mxu0 %v5258_v7 }
 0xfbc   :  { %5194 = vmatprep.subr.bf16.mxu0 %v5367_v15  ;;  %v4637_v15 = vrot.slane %v60_v2, %v2269_v16 }
 0xfbf   :  { %5195 = vmatpush3.bf16.msra.mxu0 %v5259_v25 }
0x1019   :  { %v4546_v1 = vpop.xlane.xlu0 %4545 }
0x101a   :  { %v4550_v31 = vmul.f32 0.03125, %v4546_v1 }
0x101c   :  { %v4552_v36 = vadd.f32 1e-05, %v4550_v31 }
0x101d   :  { %v4549_v63 = vpop.xlane.xlu0 %4548 }
0x101e   :  { %5332 = vrsqrt.f32 %v4552_v36  ;;  %v4551_v22 = vmul.f32 0.03125, %v4549_v63 }
0x1020   :  { %v4553_v60 = vadd.f32 1e-05, %v4551_v22 }
0x1021   :  { %v4732_v4 = vpop.permute.xlu0 %4731 }
0x1022   :  { %5334 = vrsqrt.f32 %v4553_v60  ;;  %v4738_v59 = vsel %vm4737_vm7, %v5531_v14, %v4732_v4 }
0x1023   :  { %v4741_v58 = vsel %vm4740_vm8, %v4738_v59, %v4732_v4 }
0x1024   :  { %4743 = vst [vmem:[%s6447_s7] sm:$0xff] %v4741_v58 }
0x1028   :  { %v5333_v19 = vpop.eup %5332 }
0x1029   :  { %v4556_v12 = vmul.f32 %v5333_v19, %v4540_v48 }
0x102b   :  { %v4562_v14 = vmul.f32 %v4561_v21, %v4556_v12 }
0x102c   :  { %v5335_v61 = vpop.eup %5334 }
0x102d   :  { %v4557_v47 = vmul.f32 %v5335_v61, %v4541_v53  ;;  %v4568_v20 = vadd.f32 %v4567_v51, %v4562_v14 }
0x102f   :  { %v4563_v49 = vmul.f32 %v4561_v21, %v4557_v47 }
0x1031   :  { %v4569_v27 = vadd.f32 %v4567_v51, %v4563_v49 }
0x1033   :  { %v4570_v8 = vpack.c.bf16 %v4569_v27, %v4568_v20 }
0x1035   :  { %5177 = vmatmul.mubr.msk.bf16.vlgmr.msra.gmra.mrb[80].mxu1 %vm67_vm0, %v4570_v8 }
0x1108   :  { %v4624_v9 = vpop.f32.mrb[80].mxu1 }
0x1109   :  { %v4625_v28 = vadd.f32 %v4624_v9, %v4574_v30  ;;  %v5178_v54 = vpop.f32.mrb[81].mxu1 }
0x110a   :  { %v4627_v13 = vpop.f32.mrb[82].mxu1 }
0x110b   :  { %v4628_v55 = vadd.f32 %v4627_v13, %v4574_v30  ;;  %v5179_v26 = vpop.f32.mrb[83].mxu1  ;;  %v4631_v11 = vmax.f32 %v4625_v28, 0.0 }
0x110d   :  { %v4632_v33 = vmax.f32 %v4628_v55, 0.0 }
0x110f   :  { %v4633_v32 = vpack.c.bf16 %v4632_v33, %v4631_v11 }
0x1111   :  { %5197 = vmatmul.mubr.bf16.vlgmr.msra.gmra.mrb[68].mxu0 %v4633_v32 }
0x11e4   :  { %v4720_v34 = vpop.f32.mrb[68].mxu0 }
0x11e5   :  { %v4721_v0 = vadd.f32 %v4720_v34, %v4637_v15  ;;  %v5198_v38 = vpop.f32.mrb[69].mxu0 }
0x11e6   :  { %v4723_v57 = vpop.f32.mrb[70].mxu0 }
0x11e7   :  { %v4727_v39 = vadd.f32 %v4721_v0, %v6344_v45  ;;  %v4724_v35 = vadd.f32 %v4723_v57, %v4637_v15  ;;  %v5199_v52 = vpop.f32.mrb[71].mxu0 }
0x11e9   :  { %4729 = vst.msk [vmem:[#allocation2] sm:$0xff] %vm67_vm0, %v4727_v39  ;;  %v4728_v44 = vadd.f32 %v4724_v35, %v6347_v37 }
0x11eb   :  { %4730 = vst.msk [vmem:[#allocation2 + $0x8] sm:$0xff] %vm67_vm0, %v4728_v44 }
0x11ec   :  { %5354 = shalt.err (!%p5351_p4)
}
0x11ed   :  { %s5355_s15 = scalar_lea.hbm %s6446_s6, 256 }
0x11ee   :  { %p5356_p5 = scmp.ne.s32.totalorder %s6446_s6, %s5355_s15  ;;  %p5359_p6 = scmp.lt.u32.totalorder %s5355_s15, %s6446_s6 }
0x11f0   :  { %p5361_p7 = pnand %p5359_p6, %p5356_p5 }
0x11f2   :  { %5364 = shalt.err (!%p5361_p7)
}
0x11f3   :  { %s5382_s24 = smov 128  }
0x11f4   :  { %4756 = dma.vmem_to_hbm [thread:$0]  %s4751_s2, 256, %s6446_s6, [#allocation3], %s5382_s24, %s5382_s24, %s5379_s20  }
0x11f5   :  { %5365 = dma.done.wait [#allocation3], 256  }
0x11f6   :  { %5366 = vsyncadd [#allocation3], 4294967040 }
0x11f7   :  { %4764 = vsyncpa [#allocation3], 1 }

</bundles_post_ra>
